<compile_context>
chip_gen: v5e
topology: v5e:2x2
jax: 0.10.0
libtpu: 0.0.40
codegen_flags: <defaults>
</compile_context>

<pallas_src>
import jax
import jax.numpy as jnp
from jax import lax
from jax.experimental import pallas as pl
from jax.experimental.pallas import tpu as pltpu

EPS = 1e-5
LANE = 128


# ----------------------------------------------------------------------------
# small helpers
# ----------------------------------------------------------------------------
def _round_up(x, m):
    return (x + m - 1) // m * m


def _fold_bn(gamma, beta, mean, var):
    scale = gamma / jnp.sqrt(var + EPS)
    bias = beta - mean * scale
    return scale, bias


def _pad2(mat, rows, cols):
    r, c = mat.shape
    return jnp.pad(mat, ((0, rows - r), (0, cols - c)))


def _pad_vec(v, n):
    return jnp.pad(v, (0, n - v.shape[0])).reshape(1, n)


# ----------------------------------------------------------------------------
# fused bottleneck kernel (one grid step == one image)
# ----------------------------------------------------------------------------
def _make_bottleneck_kernel(stride, Ho, Wo, has_shortcut):
    nph = stride * stride          # number of spatial phases
    M = Ho * Wo                    # output rows per image

    def kernel(*refs):
        if has_shortcut:
            (x_ref, w1_ref, s1_ref, b1_ref, w2_ref, s2_ref, b2_ref,
             w3_ref, s3_ref, b3_ref, ws_ref, ss_ref, bs_ref,
             o_ref, p1_ref) = refs
        else:
            (x_ref, w1_ref, s1_ref, b1_ref, w2_ref, s2_ref, b2_ref,
             w3_ref, s3_ref, b3_ref, o_ref, p1_ref) = refs

        cin_pad = x_ref.shape[-1]
        p_pad = w1_ref.shape[1]

        # ---- conv1 (1x1) + bn1 + relu -> zero-padded VMEM scratch --------------
        # p1_ref layout: (phase, Ho+2, Wo+2, P_pad); phase p = ph*stride + pw holds
        # conv1 output at spatial positions (h, w) with h % stride == ph,
        # w % stride == pw, at padded indices [1:Ho+1, 1:Wo+1].
        p1_ref[...] = jnp.zeros(p1_ref.shape, jnp.float32)
        w1 = w1_ref[...]
        s1 = s1_ref[...]
        b1 = b1_ref[...]
        for p in range(nph):
            xp = x_ref[p]                                        # (Ho, Wo, Cin_pad)
            h = jnp.dot(xp.reshape(M, cin_pad), w1,
                        preferred_element_type=jnp.float32)
            h = jnp.maximum(h * s1 + b1, 0.0)
            p1_ref[p, 1:Ho + 1, 1:Wo + 1, :] = h.reshape(Ho, Wo, p_pad)

        # ---- conv2 (3x3, stride, pad=1) + bn2 + relu: 9 tap matmuls ------------
        # output[ho, wo] = sum_{dh,dw} conv1[ho*s + dh - 1, wo*s + dw - 1] @ W2[dh,dw]
        # In phase coordinates every tap is a *contiguous* (Ho, Wo) window.
        acc = jnp.zeros((M, p_pad), jnp.float32)
        for dh in range(3):
            for dw in range(3):
                ph = (dh - 1) % stride
                pw = (dw - 1) % stride
                kh0 = (dh - 1) // stride + 1
                kw0 = (dw - 1) // stride + 1
                tap = p1_ref[ph * stride + pw,
                             kh0:kh0 + Ho, kw0:kw0 + Wo, :]      # (Ho, Wo, P_pad)
                acc += jnp.dot(tap.reshape(M, p_pad), w2_ref[dh * 3 + dw],
                               preferred_element_type=jnp.float32)
        h2 = jnp.maximum(acc * s2_ref[...] + b2_ref[...], 0.0)

        # ---- conv3 (1x1) + bn3, shortcut, residual add, relu -------------------
        main = jnp.dot(h2, w3_ref[...],
                       preferred_element_type=jnp.float32) * s3_ref[...] + b3_ref[...]
        if has_shortcut:
            # phase (0,0) of x == x[::stride, ::stride] -> strided 1x1 conv input
            xs = x_ref[0].reshape(M, cin_pad)
            sc = jnp.dot(xs, ws_ref[...],
                         preferred_element_type=jnp.float32) * ss_ref[...] + bs_ref[...]
        else:
            sc = x_ref[0].reshape(M, cin_pad)                    # identity shortcut
        o_ref[0] = jnp.maximum(main + sc, 0.0).astype(o_ref.dtype)

    return kernel


# ----------------------------------------------------------------------------
# Bottleneck module (eval-mode BatchNorm, deterministic synthetic parameters)
# ----------------------------------------------------------------------------
class BottleneckPallas:
    expansion = 4

    def __init__(self, key, in_planes, planes, stride=1):
        self.in_planes = in_planes
        self.planes = planes
        self.stride = stride
        out_planes = self.expansion * planes
        self.out_planes = out_planes
        self.has_shortcut = (stride != 1) or (in_planes != out_planes)

        keys = jax.random.split(key, 8)

        def conv_w(k, o, i, kh, kw):
            return 0.1 * jax.random.normal(k, (o, i, kh, kw), jnp.float32)

        def bn(k, c):
            k1, k2, k3, k4 = jax.random.split(k, 4)
            gamma = 1.0 + 0.1 * jax.random.normal(k1, (c,), jnp.float32)
            beta = 0.1 * jax.random.normal(k2, (c,), jnp.float32)
            mean = 0.1 * jax.random.normal(k3, (c,), jnp.float32)
            var = jax.random.uniform(k4, (c,), jnp.float32, 0.5, 1.5)
            return gamma, beta, mean, var

        # conv / bn parameters (PyTorch OIHW layout)
        self.w1 = conv_w(keys[0], planes, in_planes, 1, 1)
        self.bn1 = bn(keys[1], planes)
        self.w2 = conv_w(keys[2], planes, planes, 3, 3)
        self.bn2 = bn(keys[3], planes)
        self.w3 = conv_w(keys[4], out_planes, planes, 1, 1)
        self.bn3 = bn(keys[5], out_planes)
        if self.has_shortcut:
            self.ws = conv_w(keys[6], out_planes, in_planes, 1, 1)
            self.bns = bn(keys[7], out_planes)

        # lane-padded matmul-form parameters (channels -> multiples of 128)
        self.cin_pad = _round_up(in_planes, LANE)
        self.p_pad = _round_up(planes, LANE)
        self.cout_pad = _round_up(out_planes, LANE)

        self.w1_p = _pad2(self.w1.reshape(planes, in_planes).T, self.cin_pad, self.p_pad)
        s1, b1 = _fold_bn(*self.bn1)
        self.s1_p, self.b1_p = _pad_vec(s1, self.p_pad), _pad_vec(b1, self.p_pad)

        taps = []
        for dh in range(3):
            for dw in range(3):
                taps.append(_pad2(self.w2[:, :, dh, dw].T, self.p_pad, self.p_pad))
        self.w2_p = jnp.stack(taps, axis=0)                      # (9, P_pad, P_pad)
        s2, b2 = _fold_bn(*self.bn2)
        self.s2_p, self.b2_p = _pad_vec(s2, self.p_pad), _pad_vec(b2, self.p_pad)

        self.w3_p = _pad2(self.w3.reshape(out_planes, planes).T, self.p_pad, self.cout_pad)
        s3, b3 = _fold_bn(*self.bn3)
        self.s3_p, self.b3_p = _pad_vec(s3, self.cout_pad), _pad_vec(b3, self.cout_pad)

        if self.has_shortcut:
            self.ws_p = _pad2(self.ws.reshape(out_planes, in_planes).T,
                              self.cin_pad, self.cout_pad)
            ss, bs = _fold_bn(*self.bns)
            self.ss_p, self.bs_p = _pad_vec(ss, self.cout_pad), _pad_vec(bs, self.cout_pad)
        else:
            # identity shortcut implies in_planes == 4*planes -> same lane padding
            assert self.cin_pad == self.cout_pad

    def __call__(self, x_nchw):
        x = jnp.transpose(x_nchw, (0, 2, 3, 1)).astype(jnp.float32)   # NHWC
        N, H, W, Cin = x.shape
        s = self.stride
        assert Cin == self.in_planes
        assert H % s == 0 and W % s == 0
        Ho, Wo = H // s, W // s
        M = Ho * Wo
        nph = s * s

        # Layout plumbing (one XLA pass over x): pad channels to 128 lanes and split
        # the spatial phases so both the 3x3-conv stride and the shortcut subsample
        # become plain leading-dim indices inside the kernel.
        xp = jnp.pad(x, ((0, 0), (0, 0), (0, 0), (0, self.cin_pad - Cin)))
        xph = (xp.reshape(N, Ho, s, Wo, s, self.cin_pad)
                 .transpose(0, 2, 4, 1, 3, 5)
                 .reshape(N * nph, Ho, Wo, self.cin_pad))

        kernel = _make_bottleneck_kernel(s, Ho, Wo, self.has_shortcut)

        def const_spec(shape):
            # weights / scale / bias: same block every grid step -> stay resident in VMEM
            return pl.BlockSpec(shape, lambda n, _l=len(shape): (0,) * _l)

        in_specs = [
            pl.BlockSpec((nph, Ho, Wo, self.cin_pad), lambda n: (n, 0, 0, 0)),
            const_spec((self.cin_pad, self.p_pad)),
            const_spec((1, self.p_pad)),
            const_spec((1, self.p_pad)),
            const_spec((9, self.p_pad, self.p_pad)),
            const_spec((1, self.p_pad)),
            const_spec((1, self.p_pad)),
            const_spec((self.p_pad, self.cout_pad)),
            const_spec((1, self.cout_pad)),
            const_spec((1, self.cout_pad)),
        ]
        operands = [xph, self.w1_p, self.s1_p, self.b1_p, self.w2_p, self.s2_p,
                    self.b2_p, self.w3_p, self.s3_p, self.b3_p]
        if self.has_shortcut:
            in_specs += [const_spec((self.cin_pad, self.cout_pad)),
                         const_spec((1, self.cout_pad)),
                         const_spec((1, self.cout_pad))]
            operands += [self.ws_p, self.ss_p, self.bs_p]

        flops = 2 * N * M * (nph * self.cin_pad * self.p_pad
                             + 9 * self.p_pad * self.p_pad
                             + self.p_pad * self.cout_pad
                             + (self.cin_pad * self.cout_pad if self.has_shortcut else 0))
        w_bytes = 4 * (self.cin_pad * self.p_pad + 9 * self.p_pad * self.p_pad
                       + self.p_pad * self.cout_pad
                       + (self.cin_pad * self.cout_pad if self.has_shortcut else 0))
        bytes_accessed = 4 * (N * nph * M * self.cin_pad + N * M * self.cout_pad) + w_bytes

        out = pl.pallas_call(
            kernel,
            out_shape=jax.ShapeDtypeStruct((N, M, self.cout_pad), jnp.float32),
            grid=(N,),
            in_specs=in_specs,
            out_specs=pl.BlockSpec((1, M, self.cout_pad), lambda n: (n, 0, 0)),
            scratch_shapes=[pltpu.VMEM((nph, Ho + 2, Wo + 2, self.p_pad), jnp.float32)],
            compiler_params=pltpu.CompilerParams(
                dimension_semantics=("parallel",)),      # v7x: shard batch over 2 TCs
            cost_estimate=pl.CostEstimate(flops=flops, transcendentals=0,
                                          bytes_accessed=bytes_accessed),
        )(*operands)

        out = out[:, :, :self.out_planes].reshape(N, Ho, Wo, self.out_planes)
        return jnp.transpose(out, (0, 3, 1, 2))                   # -> NCHW


# ----------------------------------------------------------------------------
# Plain-JAX reference (mirrors the PyTorch forward, eval-mode BN)
# ----------------------------------------------------------------------------
def _conv(x, w, stride, pad):
    return lax.conv_general_dilated(
        x, w, (stride, stride), [(pad, pad), (pad, pad)],
        dimension_numbers=('NCHW', 'OIHW', 'NCHW'))


def _bn(y, params):
    g, b, m, v = params
    sh = (1, -1, 1, 1)
    return (y - m.reshape(sh)) / jnp.sqrt(v.reshape(sh) + EPS) * g.reshape(sh) + b.reshape(sh)


def reference_forward(block, x):
    out = jax.nn.relu(_bn(_conv(x, block.w1, 1, 0), block.bn1))
    out = jax.nn.relu(_bn(_conv(out, block.w2, block.stride, 1), block.bn2))
    out = _bn(_conv(out, block.w3, 1, 0), block.bn3)
    if block.has_shortcut:
        sc = _bn(_conv(x, block.ws, block.stride, 0), block.bns)
    else:
        sc = x
    return jax.nn.relu(out + sc)


# ----------------------------------------------------------------------------
if __name__ == "__main__":
    key = jax.random.PRNGKey(0)
    k_param, k_param2, k_x, k_x2 = jax.random.split(key, 4)

    # --- case 1: stride=2, projection shortcut (the spec's downsampling block) ---
    in_planes, planes, stride = 4, 4, 2
    block = BottleneckPallas(k_param, in_planes, planes, stride=stride)
    x = jax.random.normal(k_x, (2, in_planes, 16, 16), jnp.float32)   # NCHW

    out = jax.block_until_ready(block(x))
    ref = jax.block_until_ready(reference_forward(block, x))
    assert out.shape == ref.shape == (2, 4 * planes, 8, 8), out.shape
    err = float(jnp.max(jnp.abs(out - ref)))
    assert jnp.allclose(out, ref, atol=1e-4, rtol=1e-4), err

    # --- case 2: stride=1, identity shortcut ---
    block2 = BottleneckPallas(k_param2, 16, 4, stride=1)
    x2 = jax.random.normal(k_x2, (2, 16, 16, 16), jnp.float32)
    out2 = jax.block_until_ready(block2(x2))
    ref2 = jax.block_until_ready(reference_forward(block2, x2))
    assert out2.shape == ref2.shape == (2, 16, 16, 16), out2.shape
    err2 = float(jnp.max(jnp.abs(out2 - ref2)))
    assert jnp.allclose(out2, ref2, atol=1e-4, rtol=1e-4), err2

    print("KERNEL_OK")
</pallas_src>

<mosaic_0001>
module attributes {stable_mosaic.version = 11 : i64} {
  func.func @kernel(%arg0: i32, %arg1: memref<4x8x8x128xf32, #tpu.memory_space<vmem>>, %arg2: memref<128x128xf32, #tpu.memory_space<vmem>>, %arg3: memref<1x128xf32, #tpu.memory_space<vmem>>, %arg4: memref<1x128xf32, #tpu.memory_space<vmem>>, %arg5: memref<9x128x128xf32, #tpu.memory_space<vmem>>, %arg6: memref<1x128xf32, #tpu.memory_space<vmem>>, %arg7: memref<1x128xf32, #tpu.memory_space<vmem>>, %arg8: memref<128x128xf32, #tpu.memory_space<vmem>>, %arg9: memref<1x128xf32, #tpu.memory_space<vmem>>, %arg10: memref<1x128xf32, #tpu.memory_space<vmem>>, %arg11: memref<128x128xf32, #tpu.memory_space<vmem>>, %arg12: memref<1x128xf32, #tpu.memory_space<vmem>>, %arg13: memref<1x128xf32, #tpu.memory_space<vmem>>, %arg14: memref<1x64x128xf32, #tpu.memory_space<vmem>>, %arg15: memref<4x10x10x128xf32, #tpu.memory_space<vmem>>) attributes {dimension_semantics = [#tpu.dimension_semantics<parallel>], iteration_bounds = array<i64: 2>, scalar_prefetch = 0 : i64, scratch_operands = 1 : i64, tpu.core_type = #tpu.core_type<tc>, window_params = [{transform_indices = @transform_0, window_bounds = array<i64: 4, 8, 8, 128>}, {pipeline_mode = #tpu.pipeline_mode<synchronous>, transform_indices = @transform_1, window_bounds = array<i64: 128, 128>}, {pipeline_mode = #tpu.pipeline_mode<synchronous>, transform_indices = @transform_2, window_bounds = array<i64: 1, 128>}, {pipeline_mode = #tpu.pipeline_mode<synchronous>, transform_indices = @transform_3, window_bounds = array<i64: 1, 128>}, {pipeline_mode = #tpu.pipeline_mode<synchronous>, transform_indices = @transform_4, window_bounds = array<i64: 9, 128, 128>}, {pipeline_mode = #tpu.pipeline_mode<synchronous>, transform_indices = @transform_5, window_bounds = array<i64: 1, 128>}, {pipeline_mode = #tpu.pipeline_mode<synchronous>, transform_indices = @transform_6, window_bounds = array<i64: 1, 128>}, {pipeline_mode = #tpu.pipeline_mode<synchronous>, transform_indices = @transform_7, window_bounds = array<i64: 128, 128>}, {pipeline_mode = #tpu.pipeline_mode<synchronous>, transform_indices = @transform_8, window_bounds = array<i64: 1, 128>}, {pipeline_mode = #tpu.pipeline_mode<synchronous>, transform_indices = @transform_9, window_bounds = array<i64: 1, 128>}, {pipeline_mode = #tpu.pipeline_mode<synchronous>, transform_indices = @transform_10, window_bounds = array<i64: 128, 128>}, {pipeline_mode = #tpu.pipeline_mode<synchronous>, transform_indices = @transform_11, window_bounds = array<i64: 1, 128>}, {pipeline_mode = #tpu.pipeline_mode<synchronous>, transform_indices = @transform_12, window_bounds = array<i64: 1, 128>}, {transform_indices = @transform_13, window_bounds = array<i64: 1, 64, 128>}]} {
    %cst = arith.constant 0.000000e+00 : f32
    %0 = vector.broadcast %cst : f32 to vector<4x10x10x128xf32>
    %c0 = arith.constant 0 : index
    %c0_0 = arith.constant 0 : index
    %c0_1 = arith.constant 0 : index
    %c0_2 = arith.constant 0 : index
    %1 = vector.load %arg15[%c0, %c0_0, %c0_1, %c0_2] : memref<4x10x10x128xf32, #tpu.memory_space<vmem>>, vector<4x10x10x128xf32>
    tpu.vector_store %arg15[%c0, %c0_0, %c0_1, %c0_2], %0 {strides = array<i32>} : memref<4x10x10x128xf32, #tpu.memory_space<vmem>>, vector<4x10x10x128xf32>,
    %c0_3 = arith.constant 0 : index
    %c0_4 = arith.constant 0 : index
    %2 = vector.load %arg2[%c0_3, %c0_4] : memref<128x128xf32, #tpu.memory_space<vmem>>, vector<128x128xf32>
    %c0_5 = arith.constant 0 : index
    %c0_6 = arith.constant 0 : index
    %3 = vector.load %arg3[%c0_5, %c0_6] : memref<1x128xf32, #tpu.memory_space<vmem>>, vector<1x128xf32>
    %c0_7 = arith.constant 0 : index
    %c0_8 = arith.constant 0 : index
    %4 = vector.load %arg4[%c0_7, %c0_8] : memref<1x128xf32, #tpu.memory_space<vmem>>, vector<1x128xf32>
    %c0_9 = arith.constant 0 : index
    %c0_10 = arith.constant 0 : index
    %c0_11 = arith.constant 0 : index
    %c0_12 = arith.constant 0 : index
    %5 = vector.load %arg1[%c0_9, %c0_10, %c0_11, %c0_12] : memref<4x8x8x128xf32, #tpu.memory_space<vmem>>, vector<1x8x8x128xf32>
    %6 = vector.shape_cast %5 : vector<1x8x8x128xf32> to vector<8x8x128xf32>
    %7 = vector.shape_cast %6 : vector<8x8x128xf32> to vector<64x128xf32>
    %cst_13 = arith.constant dense<0.000000e+00> : vector<64x128xf32>
    %8 = tpu.matmul %7, %2, %cst_13 {dimension_numbers = #tpu.dot_dimension_numbers<[1], [0], [0], [1], [0, 0, 1, 1], [], []>} : vector<64x128xf32>, vector<128x128xf32>, vector<64x128xf32> -> vector<64x128xf32>
    %9 = vector.broadcast %3 : vector<1x128xf32> to vector<64x128xf32>
    %10 = arith.mulf %8, %9 : vector<64x128xf32>
    %11 = vector.broadcast %4 : vector<1x128xf32> to vector<64x128xf32>
    %12 = arith.addf %10, %11 : vector<64x128xf32>
    %cst_14 = arith.constant 0.000000e+00 : f32
    %13 = vector.broadcast %cst_14 : f32 to vector<64x128xf32>
    %14 = arith.maximumf %12, %13 : vector<64x128xf32>
    %15 = vector.shape_cast %14 : vector<64x128xf32> to vector<8x8x128xf32>
    %c0_15 = arith.constant 0 : index
    %c1 = arith.constant 1 : index
    %c1_16 = arith.constant 1 : index
    %c0_17 = arith.constant 0 : index
    %16 = vector.load %arg15[%c0_15, %c1, %c1_16, %c0_17] : memref<4x10x10x128xf32, #tpu.memory_space<vmem>>, vector<1x8x8x128xf32>
    %17 = vector.shape_cast %16 : vector<1x8x8x128xf32> to vector<8x8x128xf32>
    %18 = vector.shape_cast %15 : vector<8x8x128xf32> to vector<1x8x8x128xf32>
    tpu.vector_store %arg15[%c0_15, %c1, %c1_16, %c0_17], %18 {strides = array<i32>} : memref<4x10x10x128xf32, #tpu.memory_space<vmem>>, vector<1x8x8x128xf32>,
    %c1_18 = arith.constant 1 : index
    %c0_19 = arith.constant 0 : index
    %c0_20 = arith.constant 0 : index
    %c0_21 = arith.constant 0 : index
    %19 = vector.load %arg1[%c1_18, %c0_19, %c0_20, %c0_21] : memref<4x8x8x128xf32, #tpu.memory_space<vmem>>, vector<1x8x8x128xf32>
    %20 = vector.shape_cast %19 : vector<1x8x8x128xf32> to vector<8x8x128xf32>
    %21 = vector.shape_cast %20 : vector<8x8x128xf32> to vector<64x128xf32>
    %cst_22 = arith.constant dense<0.000000e+00> : vector<64x128xf32>
    %22 = tpu.matmul %21, %2, %cst_22 {dimension_numbers = #tpu.dot_dimension_numbers<[1], [0], [0], [1], [0, 0, 1, 1], [], []>} : vector<64x128xf32>, vector<128x128xf32>, vector<64x128xf32> -> vector<64x128xf32>
    %23 = vector.broadcast %3 : vector<1x128xf32> to vector<64x128xf32>
    %24 = arith.mulf %22, %23 : vector<64x128xf32>
    %25 = vector.broadcast %4 : vector<1x128xf32> to vector<64x128xf32>
    %26 = arith.addf %24, %25 : vector<64x128xf32>
    %cst_23 = arith.constant 0.000000e+00 : f32
    %27 = vector.broadcast %cst_23 : f32 to vector<64x128xf32>
    %28 = arith.maximumf %26, %27 : vector<64x128xf32>
    %29 = vector.shape_cast %28 : vector<64x128xf32> to vector<8x8x128xf32>
    %c1_24 = arith.constant 1 : index
    %c1_25 = arith.constant 1 : index
    %c1_26 = arith.constant 1 : index
    %c0_27 = arith.constant 0 : index
    %30 = vector.load %arg15[%c1_24, %c1_25, %c1_26, %c0_27] : memref<4x10x10x128xf32, #tpu.memory_space<vmem>>, vector<1x8x8x128xf32>
    %31 = vector.shape_cast %30 : vector<1x8x8x128xf32> to vector<8x8x128xf32>
    %32 = vector.shape_cast %29 : vector<8x8x128xf32> to vector<1x8x8x128xf32>
    tpu.vector_store %arg15[%c1_24, %c1_25, %c1_26, %c0_27], %32 {strides = array<i32>} : memref<4x10x10x128xf32, #tpu.memory_space<vmem>>, vector<1x8x8x128xf32>,
    %c2 = arith.constant 2 : index
    %c0_28 = arith.constant 0 : index
    %c0_29 = arith.constant 0 : index
    %c0_30 = arith.constant 0 : index
    %33 = vector.load %arg1[%c2, %c0_28, %c0_29, %c0_30] : memref<4x8x8x128xf32, #tpu.memory_space<vmem>>, vector<1x8x8x128xf32>
    %34 = vector.shape_cast %33 : vector<1x8x8x128xf32> to vector<8x8x128xf32>
    %35 = vector.shape_cast %34 : vector<8x8x128xf32> to vector<64x128xf32>
    %cst_31 = arith.constant dense<0.000000e+00> : vector<64x128xf32>
    %36 = tpu.matmul %35, %2, %cst_31 {dimension_numbers = #tpu.dot_dimension_numbers<[1], [0], [0], [1], [0, 0, 1, 1], [], []>} : vector<64x128xf32>, vector<128x128xf32>, vector<64x128xf32> -> vector<64x128xf32>
    %37 = vector.broadcast %3 : vector<1x128xf32> to vector<64x128xf32>
    %38 = arith.mulf %36, %37 : vector<64x128xf32>
    %39 = vector.broadcast %4 : vector<1x128xf32> to vector<64x128xf32>
    %40 = arith.addf %38, %39 : vector<64x128xf32>
    %cst_32 = arith.constant 0.000000e+00 : f32
    %41 = vector.broadcast %cst_32 : f32 to vector<64x128xf32>
    %42 = arith.maximumf %40, %41 : vector<64x128xf32>
    %43 = vector.shape_cast %42 : vector<64x128xf32> to vector<8x8x128xf32>
    %c2_33 = arith.constant 2 : index
    %c1_34 = arith.constant 1 : index
    %c1_35 = arith.constant 1 : index
    %c0_36 = arith.constant 0 : index
    %44 = vector.load %arg15[%c2_33, %c1_34, %c1_35, %c0_36] : memref<4x10x10x128xf32, #tpu.memory_space<vmem>>, vector<1x8x8x128xf32>
    %45 = vector.shape_cast %44 : vector<1x8x8x128xf32> to vector<8x8x128xf32>
    %46 = vector.shape_cast %43 : vector<8x8x128xf32> to vector<1x8x8x128xf32>
    tpu.vector_store %arg15[%c2_33, %c1_34, %c1_35, %c0_36], %46 {strides = array<i32>} : memref<4x10x10x128xf32, #tpu.memory_space<vmem>>, vector<1x8x8x128xf32>,
    %c3 = arith.constant 3 : index
    %c0_37 = arith.constant 0 : index
    %c0_38 = arith.constant 0 : index
    %c0_39 = arith.constant 0 : index
    %47 = vector.load %arg1[%c3, %c0_37, %c0_38, %c0_39] : memref<4x8x8x128xf32, #tpu.memory_space<vmem>>, vector<1x8x8x128xf32>
    %48 = vector.shape_cast %47 : vector<1x8x8x128xf32> to vector<8x8x128xf32>
    %49 = vector.shape_cast %48 : vector<8x8x128xf32> to vector<64x128xf32>
    %cst_40 = arith.constant dense<0.000000e+00> : vector<64x128xf32>
    %50 = tpu.matmul %49, %2, %cst_40 {dimension_numbers = #tpu.dot_dimension_numbers<[1], [0], [0], [1], [0, 0, 1, 1], [], []>} : vector<64x128xf32>, vector<128x128xf32>, vector<64x128xf32> -> vector<64x128xf32>
    %51 = vector.broadcast %3 : vector<1x128xf32> to vector<64x128xf32>
    %52 = arith.mulf %50, %51 : vector<64x128xf32>
    %53 = vector.broadcast %4 : vector<1x128xf32> to vector<64x128xf32>
    %54 = arith.addf %52, %53 : vector<64x128xf32>
    %cst_41 = arith.constant 0.000000e+00 : f32
    %55 = vector.broadcast %cst_41 : f32 to vector<64x128xf32>
    %56 = arith.maximumf %54, %55 : vector<64x128xf32>
    %57 = vector.shape_cast %56 : vector<64x128xf32> to vector<8x8x128xf32>
    %c3_42 = arith.constant 3 : index
    %c1_43 = arith.constant 1 : index
    %c1_44 = arith.constant 1 : index
    %c0_45 = arith.constant 0 : index
    %58 = vector.load %arg15[%c3_42, %c1_43, %c1_44, %c0_45] : memref<4x10x10x128xf32, #tpu.memory_space<vmem>>, vector<1x8x8x128xf32>
    %59 = vector.shape_cast %58 : vector<1x8x8x128xf32> to vector<8x8x128xf32>
    %60 = vector.shape_cast %57 : vector<8x8x128xf32> to vector<1x8x8x128xf32>
    tpu.vector_store %arg15[%c3_42, %c1_43, %c1_44, %c0_45], %60 {strides = array<i32>} : memref<4x10x10x128xf32, #tpu.memory_space<vmem>>, vector<1x8x8x128xf32>,
    %cst_46 = arith.constant 0.000000e+00 : f32
    %61 = vector.broadcast %cst_46 : f32 to vector<64x128xf32>
    %c3_47 = arith.constant 3 : index
    %c0_48 = arith.constant 0 : index
    %c0_49 = arith.constant 0 : index
    %c0_50 = arith.constant 0 : index
    %62 = vector.load %arg15[%c3_47, %c0_48, %c0_49, %c0_50] : memref<4x10x10x128xf32, #tpu.memory_space<vmem>>, vector<1x8x8x128xf32>
    %63 = vector.shape_cast %62 : vector<1x8x8x128xf32> to vector<8x8x128xf32>
    %64 = vector.shape_cast %63 : vector<8x8x128xf32> to vector<64x128xf32>
    %c0_51 = arith.constant 0 : index
    %c0_52 = arith.constant 0 : index
    %c0_53 = arith.constant 0 : index
    %65 = vector.load %arg5[%c0_51, %c0_52, %c0_53] : memref<9x128x128xf32, #tpu.memory_space<vmem>>, vector<1x128x128xf32>
    %66 = vector.shape_cast %65 : vector<1x128x128xf32> to vector<128x128xf32>
    %cst_54 = arith.constant dense<0.000000e+00> : vector<64x128xf32>
    %67 = tpu.matmul %64, %66, %cst_54 {dimension_numbers = #tpu.dot_dimension_numbers<[1], [0], [0], [1], [0, 0, 1, 1], [], []>} : vector<64x128xf32>, vector<128x128xf32>, vector<64x128xf32> -> vector<64x128xf32>
    %68 = arith.addf %61, %67 : vector<64x128xf32>
    %c2_55 = arith.constant 2 : index
    %c0_56 = arith.constant 0 : index
    %c1_57 = arith.constant 1 : index
    %c0_58 = arith.constant 0 : index
    %69 = vector.load %arg15[%c2_55, %c0_56, %c1_57, %c0_58] : memref<4x10x10x128xf32, #tpu.memory_space<vmem>>, vector<1x8x8x128xf32>
    %70 = vector.shape_cast %69 : vector<1x8x8x128xf32> to vector<8x8x128xf32>
    %71 = vector.shape_cast %70 : vector<8x8x128xf32> to vector<64x128xf32>
    %c1_59 = arith.constant 1 : index
    %c0_60 = arith.constant 0 : index
    %c0_61 = arith.constant 0 : index
    %72 = vector.load %arg5[%c1_59, %c0_60, %c0_61] : memref<9x128x128xf32, #tpu.memory_space<vmem>>, vector<1x128x128xf32>
    %73 = vector.shape_cast %72 : vector<1x128x128xf32> to vector<128x128xf32>
    %cst_62 = arith.constant dense<0.000000e+00> : vector<64x128xf32>
    %74 = tpu.matmul %71, %73, %cst_62 {dimension_numbers = #tpu.dot_dimension_numbers<[1], [0], [0], [1], [0, 0, 1, 1], [], []>} : vector<64x128xf32>, vector<128x128xf32>, vector<64x128xf32> -> vector<64x128xf32>
    %75 = arith.addf %68, %74 : vector<64x128xf32>
    %c3_63 = arith.constant 3 : index
    %c0_64 = arith.constant 0 : index
    %c1_65 = arith.constant 1 : index
    %c0_66 = arith.constant 0 : index
    %76 = vector.load %arg15[%c3_63, %c0_64, %c1_65, %c0_66] : memref<4x10x10x128xf32, #tpu.memory_space<vmem>>, vector<1x8x8x128xf32>
    %77 = vector.shape_cast %76 : vector<1x8x8x128xf32> to vector<8x8x128xf32>
    %78 = vector.shape_cast %77 : vector<8x8x128xf32> to vector<64x128xf32>
    %c2_67 = arith.constant 2 : index
    %c0_68 = arith.constant 0 : index
    %c0_69 = arith.constant 0 : index
    %79 = vector.load %arg5[%c2_67, %c0_68, %c0_69] : memref<9x128x128xf32, #tpu.memory_space<vmem>>, vector<1x128x128xf32>
    %80 = vector.shape_cast %79 : vector<1x128x128xf32> to vector<128x128xf32>
    %cst_70 = arith.constant dense<0.000000e+00> : vector<64x128xf32>
    %81 = tpu.matmul %78, %80, %cst_70 {dimension_numbers = #tpu.dot_dimension_numbers<[1], [0], [0], [1], [0, 0, 1, 1], [], []>} : vector<64x128xf32>, vector<128x128xf32>, vector<64x128xf32> -> vector<64x128xf32>
    %82 = arith.addf %75, %81 : vector<64x128xf32>
    %c1_71 = arith.constant 1 : index
    %c1_72 = arith.constant 1 : index
    %c0_73 = arith.constant 0 : index
    %c0_74 = arith.constant 0 : index
    %83 = vector.load %arg15[%c1_71, %c1_72, %c0_73, %c0_74] : memref<4x10x10x128xf32, #tpu.memory_space<vmem>>, vector<1x8x8x128xf32>
    %84 = vector.shape_cast %83 : vector<1x8x8x128xf32> to vector<8x8x128xf32>
    %85 = vector.shape_cast %84 : vector<8x8x128xf32> to vector<64x128xf32>
    %c3_75 = arith.constant 3 : index
    %c0_76 = arith.constant 0 : index
    %c0_77 = arith.constant 0 : index
    %86 = vector.load %arg5[%c3_75, %c0_76, %c0_77] : memref<9x128x128xf32, #tpu.memory_space<vmem>>, vector<1x128x128xf32>
    %87 = vector.shape_cast %86 : vector<1x128x128xf32> to vector<128x128xf32>
    %cst_78 = arith.constant dense<0.000000e+00> : vector<64x128xf32>
    %88 = tpu.matmul %85, %87, %cst_78 {dimension_numbers = #tpu.dot_dimension_numbers<[1], [0], [0], [1], [0, 0, 1, 1], [], []>} : vector<64x128xf32>, vector<128x128xf32>, vector<64x128xf32> -> vector<64x128xf32>
    %89 = arith.addf %82, %88 : vector<64x128xf32>
    %c0_79 = arith.constant 0 : index
    %c1_80 = arith.constant 1 : index
    %c1_81 = arith.constant 1 : index
    %c0_82 = arith.constant 0 : index
    %90 = vector.load %arg15[%c0_79, %c1_80, %c1_81, %c0_82] : memref<4x10x10x128xf32, #tpu.memory_space<vmem>>, vector<1x8x8x128xf32>
    %91 = vector.shape_cast %90 : vector<1x8x8x128xf32> to vector<8x8x128xf32>
    %92 = vector.shape_cast %91 : vector<8x8x128xf32> to vector<64x128xf32>
    %c4 = arith.constant 4 : index
    %c0_83 = arith.constant 0 : index
    %c0_84 = arith.constant 0 : index
    %93 = vector.load %arg5[%c4, %c0_83, %c0_84] : memref<9x128x128xf32, #tpu.memory_space<vmem>>, vector<1x128x128xf32>
    %94 = vector.shape_cast %93 : vector<1x128x128xf32> to vector<128x128xf32>
    %cst_85 = arith.constant dense<0.000000e+00> : vector<64x128xf32>
    %95 = tpu.matmul %92, %94, %cst_85 {dimension_numbers = #tpu.dot_dimension_numbers<[1], [0], [0], [1], [0, 0, 1, 1], [], []>} : vector<64x128xf32>, vector<128x128xf32>, vector<64x128xf32> -> vector<64x128xf32>
    %96 = arith.addf %89, %95 : vector<64x128xf32>
    %c1_86 = arith.constant 1 : index
    %c1_87 = arith.constant 1 : index
    %c1_88 = arith.constant 1 : index
    %c0_89 = arith.constant 0 : index
    %97 = vector.load %arg15[%c1_86, %c1_87, %c1_88, %c0_89] : memref<4x10x10x128xf32, #tpu.memory_space<vmem>>, vector<1x8x8x128xf32>
    %98 = vector.shape_cast %97 : vector<1x8x8x128xf32> to vector<8x8x128xf32>
    %99 = vector.shape_cast %98 : vector<8x8x128xf32> to vector<64x128xf32>
    %c5 = arith.constant 5 : index
    %c0_90 = arith.constant 0 : index
    %c0_91 = arith.constant 0 : index
    %100 = vector.load %arg5[%c5, %c0_90, %c0_91] : memref<9x128x128xf32, #tpu.memory_space<vmem>>, vector<1x128x128xf32>
    %101 = vector.shape_cast %100 : vector<1x128x128xf32> to vector<128x128xf32>
    %cst_92 = arith.constant dense<0.000000e+00> : vector<64x128xf32>
    %102 = tpu.matmul %99, %101, %cst_92 {dimension_numbers = #tpu.dot_dimension_numbers<[1], [0], [0], [1], [0, 0, 1, 1], [], []>} : vector<64x128xf32>, vector<128x128xf32>, vector<64x128xf32> -> vector<64x128xf32>
    %103 = arith.addf %96, %102 : vector<64x128xf32>
    %c3_93 = arith.constant 3 : index
    %c1_94 = arith.constant 1 : index
    %c0_95 = arith.constant 0 : index
    %c0_96 = arith.constant 0 : index
    %104 = vector.load %arg15[%c3_93, %c1_94, %c0_95, %c0_96] : memref<4x10x10x128xf32, #tpu.memory_space<vmem>>, vector<1x8x8x128xf32>
    %105 = vector.shape_cast %104 : vector<1x8x8x128xf32> to vector<8x8x128xf32>
    %106 = vector.shape_cast %105 : vector<8x8x128xf32> to vector<64x128xf32>
    %c6 = arith.constant 6 : index
    %c0_97 = arith.constant 0 : index
    %c0_98 = arith.constant 0 : index
    %107 = vector.load %arg5[%c6, %c0_97, %c0_98] : memref<9x128x128xf32, #tpu.memory_space<vmem>>, vector<1x128x128xf32>
    %108 = vector.shape_cast %107 : vector<1x128x128xf32> to vector<128x128xf32>
    %cst_99 = arith.constant dense<0.000000e+00> : vector<64x128xf32>
    %109 = tpu.matmul %106, %108, %cst_99 {dimension_numbers = #tpu.dot_dimension_numbers<[1], [0], [0], [1], [0, 0, 1, 1], [], []>} : vector<64x128xf32>, vector<128x128xf32>, vector<64x128xf32> -> vector<64x128xf32>
    %110 = arith.addf %103, %109 : vector<64x128xf32>
    %c2_100 = arith.constant 2 : index
    %c1_101 = arith.constant 1 : index
    %c1_102 = arith.constant 1 : index
    %c0_103 = arith.constant 0 : index
    %111 = vector.load %arg15[%c2_100, %c1_101, %c1_102, %c0_103] : memref<4x10x10x128xf32, #tpu.memory_space<vmem>>, vector<1x8x8x128xf32>
    %112 = vector.shape_cast %111 : vector<1x8x8x128xf32> to vector<8x8x128xf32>
    %113 = vector.shape_cast %112 : vector<8x8x128xf32> to vector<64x128xf32>
    %c7 = arith.constant 7 : index
    %c0_104 = arith.constant 0 : index
    %c0_105 = arith.constant 0 : index
    %114 = vector.load %arg5[%c7, %c0_104, %c0_105] : memref<9x128x128xf32, #tpu.memory_space<vmem>>, vector<1x128x128xf32>
    %115 = vector.shape_cast %114 : vector<1x128x128xf32> to vector<128x128xf32>
    %cst_106 = arith.constant dense<0.000000e+00> : vector<64x128xf32>
    %116 = tpu.matmul %113, %115, %cst_106 {dimension_numbers = #tpu.dot_dimension_numbers<[1], [0], [0], [1], [0, 0, 1, 1], [], []>} : vector<64x128xf32>, vector<128x128xf32>, vector<64x128xf32> -> vector<64x128xf32>
    %117 = arith.addf %110, %116 : vector<64x128xf32>
    %c3_107 = arith.constant 3 : index
    %c1_108 = arith.constant 1 : index
    %c1_109 = arith.constant 1 : index
    %c0_110 = arith.constant 0 : index
    %118 = vector.load %arg15[%c3_107, %c1_108, %c1_109, %c0_110] : memref<4x10x10x128xf32, #tpu.memory_space<vmem>>, vector<1x8x8x128xf32>
    %119 = vector.shape_cast %118 : vector<1x8x8x128xf32> to vector<8x8x128xf32>
    %120 = vector.shape_cast %119 : vector<8x8x128xf32> to vector<64x128xf32>
    %c8 = arith.constant 8 : index
    %c0_111 = arith.constant 0 : index
    %c0_112 = arith.constant 0 : index
    %121 = vector.load %arg5[%c8, %c0_111, %c0_112] : memref<9x128x128xf32, #tpu.memory_space<vmem>>, vector<1x128x128xf32>
    %122 = vector.shape_cast %121 : vector<1x128x128xf32> to vector<128x128xf32>
    %cst_113 = arith.constant dense<0.000000e+00> : vector<64x128xf32>
    %123 = tpu.matmul %120, %122, %cst_113 {dimension_numbers = #tpu.dot_dimension_numbers<[1], [0], [0], [1], [0, 0, 1, 1], [], []>} : vector<64x128xf32>, vector<128x128xf32>, vector<64x128xf32> -> vector<64x128xf32>
    %124 = arith.addf %117, %123 : vector<64x128xf32>
    %c0_114 = arith.constant 0 : index
    %c0_115 = arith.constant 0 : index
    %125 = vector.load %arg6[%c0_114, %c0_115] : memref<1x128xf32, #tpu.memory_space<vmem>>, vector<1x128xf32>
    %126 = vector.broadcast %125 : vector<1x128xf32> to vector<64x128xf32>
    %127 = arith.mulf %124, %126 : vector<64x128xf32>
    %c0_116 = arith.constant 0 : index
    %c0_117 = arith.constant 0 : index
    %128 = vector.load %arg7[%c0_116, %c0_117] : memref<1x128xf32, #tpu.memory_space<vmem>>, vector<1x128xf32>
    %129 = vector.broadcast %128 : vector<1x128xf32> to vector<64x128xf32>
    %130 = arith.addf %127, %129 : vector<64x128xf32>
    %cst_118 = arith.constant 0.000000e+00 : f32
    %131 = vector.broadcast %cst_118 : f32 to vector<64x128xf32>
    %132 = arith.maximumf %130, %131 : vector<64x128xf32>
    %c0_119 = arith.constant 0 : index
    %c0_120 = arith.constant 0 : index
    %133 = vector.load %arg8[%c0_119, %c0_120] : memref<128x128xf32, #tpu.memory_space<vmem>>, vector<128x128xf32>
    %cst_121 = arith.constant dense<0.000000e+00> : vector<64x128xf32>
    %134 = tpu.matmul %132, %133, %cst_121 {dimension_numbers = #tpu.dot_dimension_numbers<[1], [0], [0], [1], [0, 0, 1, 1], [], []>} : vector<64x128xf32>, vector<128x128xf32>, vector<64x128xf32> -> vector<64x128xf32>
    %c0_122 = arith.constant 0 : index
    %c0_123 = arith.constant 0 : index
    %135 = vector.load %arg9[%c0_122, %c0_123] : memref<1x128xf32, #tpu.memory_space<vmem>>, vector<1x128xf32>
    %136 = vector.broadcast %135 : vector<1x128xf32> to vector<64x128xf32>
    %137 = arith.mulf %134, %136 : vector<64x128xf32>
    %c0_124 = arith.constant 0 : index
    %c0_125 = arith.constant 0 : index
    %138 = vector.load %arg10[%c0_124, %c0_125] : memref<1x128xf32, #tpu.memory_space<vmem>>, vector<1x128xf32>
    %139 = vector.broadcast %138 : vector<1x128xf32> to vector<64x128xf32>
    %140 = arith.addf %137, %139 : vector<64x128xf32>
    %c0_126 = arith.constant 0 : index
    %c0_127 = arith.constant 0 : index
    %c0_128 = arith.constant 0 : index
    %c0_129 = arith.constant 0 : index
    %141 = vector.load %arg1[%c0_126, %c0_127, %c0_128, %c0_129] : memref<4x8x8x128xf32, #tpu.memory_space<vmem>>, vector<1x8x8x128xf32>
    %142 = vector.shape_cast %141 : vector<1x8x8x128xf32> to vector<8x8x128xf32>
    %143 = vector.shape_cast %142 : vector<8x8x128xf32> to vector<64x128xf32>
    %c0_130 = arith.constant 0 : index
    %c0_131 = arith.constant 0 : index
    %144 = vector.load %arg11[%c0_130, %c0_131] : memref<128x128xf32, #tpu.memory_space<vmem>>, vector<128x128xf32>
    %cst_132 = arith.constant dense<0.000000e+00> : vector<64x128xf32>
    %145 = tpu.matmul %143, %144, %cst_132 {dimension_numbers = #tpu.dot_dimension_numbers<[1], [0], [0], [1], [0, 0, 1, 1], [], []>} : vector<64x128xf32>, vector<128x128xf32>, vector<64x128xf32> -> vector<64x128xf32>
    %c0_133 = arith.constant 0 : index
    %c0_134 = arith.constant 0 : index
    %146 = vector.load %arg12[%c0_133, %c0_134] : memref<1x128xf32, #tpu.memory_space<vmem>>, vector<1x128xf32>
    %147 = vector.broadcast %146 : vector<1x128xf32> to vector<64x128xf32>
    %148 = arith.mulf %145, %147 : vector<64x128xf32>
    %c0_135 = arith.constant 0 : index
    %c0_136 = arith.constant 0 : index
    %149 = vector.load %arg13[%c0_135, %c0_136] : memref<1x128xf32, #tpu.memory_space<vmem>>, vector<1x128xf32>
    %150 = vector.broadcast %149 : vector<1x128xf32> to vector<64x128xf32>
    %151 = arith.addf %148, %150 : vector<64x128xf32>
    %152 = arith.addf %140, %151 : vector<64x128xf32>
    %cst_137 = arith.constant 0.000000e+00 : f32
    %153 = vector.broadcast %cst_137 : f32 to vector<64x128xf32>
    %154 = arith.maximumf %152, %153 : vector<64x128xf32>
    %c0_138 = arith.constant 0 : index
    %c0_139 = arith.constant 0 : index
    %c0_140 = arith.constant 0 : index
    %155 = vector.load %arg14[%c0_138, %c0_139, %c0_140] : memref<1x64x128xf32, #tpu.memory_space<vmem>>, vector<1x64x128xf32>
    %156 = vector.shape_cast %155 : vector<1x64x128xf32> to vector<64x128xf32>
    %157 = vector.shape_cast %154 : vector<64x128xf32> to vector<1x64x128xf32>
    tpu.vector_store %arg14[%c0_138, %c0_139, %c0_140], %157 {strides = array<i32>} : memref<1x64x128xf32, #tpu.memory_space<vmem>>, vector<1x64x128xf32>,
    return
  }
  func.func @transform_0(%arg0: i32) -> (i32, i32, i32, i32) {
    %c0_i32 = arith.constant 0 : i32
    %c0_i32_0 = arith.constant 0 : i32
    %c0_i32_1 = arith.constant 0 : i32
    %c0_i32_2 = arith.constant 0 : i32
    return %arg0, %c0_i32, %c0_i32_0, %c0_i32_1 : i32, i32, i32, i32
  }
  func.func @transform_1(%arg0: i32) -> (i32, i32) {
    %c0_i32 = arith.constant 0 : i32
    %c0_i32_0 = arith.constant 0 : i32
    %c0_i32_1 = arith.constant 0 : i32
    return %c0_i32, %c0_i32_0 : i32, i32
  }
  func.func @transform_2(%arg0: i32) -> (i32, i32) {
    %c0_i32 = arith.constant 0 : i32
    %c0_i32_0 = arith.constant 0 : i32
    %c0_i32_1 = arith.constant 0 : i32
    return %c0_i32, %c0_i32_0 : i32, i32
  }
  func.func @transform_3(%arg0: i32) -> (i32, i32) {
    %c0_i32 = arith.constant 0 : i32
    %c0_i32_0 = arith.constant 0 : i32
    %c0_i32_1 = arith.constant 0 : i32
    return %c0_i32, %c0_i32_0 : i32, i32
  }
  func.func @transform_4(%arg0: i32) -> (i32, i32, i32) {
    %c0_i32 = arith.constant 0 : i32
    %c0_i32_0 = arith.constant 0 : i32
    %c0_i32_1 = arith.constant 0 : i32
    %c0_i32_2 = arith.constant 0 : i32
    return %c0_i32, %c0_i32_0, %c0_i32_1 : i32, i32, i32
  }
  func.func @transform_5(%arg0: i32) -> (i32, i32) {
    %c0_i32 = arith.constant 0 : i32
    %c0_i32_0 = arith.constant 0 : i32
    %c0_i32_1 = arith.constant 0 : i32
    return %c0_i32, %c0_i32_0 : i32, i32
  }
  func.func @transform_6(%arg0: i32) -> (i32, i32) {
    %c0_i32 = arith.constant 0 : i32
    %c0_i32_0 = arith.constant 0 : i32
    %c0_i32_1 = arith.constant 0 : i32
    return %c0_i32, %c0_i32_0 : i32, i32
  }
  func.func @transform_7(%arg0: i32) -> (i32, i32) {
    %c0_i32 = arith.constant 0 : i32
    %c0_i32_0 = arith.constant 0 : i32
    %c0_i32_1 = arith.constant 0 : i32
    return %c0_i32, %c0_i32_0 : i32, i32
  }
  func.func @transform_8(%arg0: i32) -> (i32, i32) {
    %c0_i32 = arith.constant 0 : i32
    %c0_i32_0 = arith.constant 0 : i32
    %c0_i32_1 = arith.constant 0 : i32
    return %c0_i32, %c0_i32_0 : i32, i32
  }
  func.func @transform_9(%arg0: i32) -> (i32, i32) {
    %c0_i32 = arith.constant 0 : i32
    %c0_i32_0 = arith.constant 0 : i32
    %c0_i32_1 = arith.constant 0 : i32
    return %c0_i32, %c0_i32_0 : i32, i32
  }
  func.func @transform_10(%arg0: i32) -> (i32, i32) {
    %c0_i32 = arith.constant 0 : i32
    %c0_i32_0 = arith.constant 0 : i32
    %c0_i32_1 = arith.constant 0 : i32
    return %c0_i32, %c0_i32_0 : i32, i32
  }
  func.func @transform_11(%arg0: i32) -> (i32, i32) {
    %c0_i32 = arith.constant 0 : i32
    %c0_i32_0 = arith.constant 0 : i32
    %c0_i32_1 = arith.constant 0 : i32
    return %c0_i32, %c0_i32_0 : i32, i32
  }
  func.func @transform_12(%arg0: i32) -> (i32, i32) {
    %c0_i32 = arith.constant 0 : i32
    %c0_i32_0 = arith.constant 0 : i32
    %c0_i32_1 = arith.constant 0 : i32
    return %c0_i32, %c0_i32_0 : i32, i32
  }
  func.func @transform_13(%arg0: i32) -> (i32, i32, i32) {
    %c0_i32 = arith.constant 0 : i32
    %c0_i32_0 = arith.constant 0 : i32
    %c0_i32_1 = arith.constant 0 : i32
    return %arg0, %c0_i32, %c0_i32_0 : i32, i32, i32
  }
}

</mosaic_0001>

<bundles_post_ra>
// kernel: tpu_custom_call.1
= control target key start
LH: loop header
LB: loop body
LE: loop exit
PB: predicated region body
PF: predicated region fallthrough
CT: control target
= control target key end

     0   :  { %s3304_s0 = inlined_call_operand.hbm [shape: f32[8,8,8,128], index: 0, kind: input, shape index: {}]   ;;  %s3305_s1 = inlined_call_operand.hbm [shape: f32[128,128], index: 1, kind: input, shape index: {}]   ;;  %s3306_s2 = inlined_call_operand.vmem [shape: f32[1,128], index: 2, kind: input, shape index: {}]   ;;  %s3307_s3 = inlined_call_operand.vmem [shape: f32[1,128], index: 3, kind: input, shape index: {}]   ;;  %s3308_s4 = inlined_call_operand.hbm [shape: f32[9,128,128], index: 4, kind: input, shape index: {}]   ;;  %s3309_s5 = inlined_call_operand.vmem [shape: f32[1,128], index: 5, kind: input, shape index: {}]   ;;  %s3310_s6 = inlined_call_operand.vmem [shape: f32[1,128], index: 6, kind: input, shape index: {}]   ;;  %s3311_s7 = inlined_call_operand.hbm [shape: f32[128,128], index: 7, kind: input, shape index: {}]   ;;  %s3312_s8 = inlined_call_operand.vmem [shape: f32[1,128], index: 8, kind: input, shape index: {}]   ;;  %s3313_s9 = inlined_call_operand.vmem [shape: f32[1,128], index: 9, kind: input, shape index: {}]   ;;  %s3314_s10 = inlined_call_operand.hbm [shape: f32[128,128], index: 10, kind: input, shape index: {}]   ;;  %s3315_s11 = inlined_call_operand.vmem [shape: f32[1,128], index: 11, kind: input, shape index: {}]   ;;  %s3316_s12 = inlined_call_operand.vmem [shape: f32[1,128], index: 12, kind: input, shape index: {}]   ;;  %s3317_s13 = inlined_call_operand.hbm [shape: f32[2,64,128], index: 13, kind: output, shape index: {}]  }
   0x1   :  { %3328 = sst [smem:[#allocation19_spill]] %s3305_s1 }
   0x2   :  { %3329 = sst [smem:[#allocation20_spill]] %s3308_s4 }
   0x3   :  { %3330 = sst [smem:[#allocation21_spill]] %s3311_s7 }
   0x4   :  { %3331 = sst [smem:[#allocation22_spill]] %s3314_s10 }
   0x5   :  { %3332 = sst [smem:[#allocation23_spill]] %s3317_s13 }
   0x6   :  { %18 = vsyncpa [#allocation4], 0 }
   0x7   :  { %20 = vsyncpa [#allocation4 + $0x1], 0 }
   0x8   :  { %21 = vsyncpa [#allocation7], 0 }
   0x9   :  { %22 = vsyncpa [#allocation10], 0 }
   0xa   :  { %23 = vsyncpa [#allocation5], 0 }
   0xb   :  { %25 = vsyncpa [#allocation5 + $0x1], 0  ;;  %s2471_s25 = smov 0   ;;  %s2473_s26 = smov 0  }
   0xc   :  { %s2475_s27 = smov 0   ;;  %s2477_s28 = smov 0  }
   0xd LB: > { %3333 = sst [smem:[#allocation17_spill]] %s2378_s25  ;;  %s2492_s29 = sadd.s32 4294967295, %s2390_s28   ;;  %s2390_s28 = sphi %s2477_s28, %s3360_s28   ;;  %s2386_s27 = sphi %s2475_s27, %s3359_s27   ;;  %s2382_s26 = sphi %s2473_s26, %s3358_s26   ;;  %s2378_s25 = sphi %s2471_s25, %s3357_s25  }
   0xe   : > { %s1968_s30 = sadd.s32 4294967294, %s2390_s28   ;;  %p51_p0 = scmp.ne.s32.totalorder %s2382_s26, %s2378_s25 }
   0xf   : > { %p52_p1 = scmp.eq.s32.totalorder %s2492_s29, 0  ;;  %p327_p2 = scmp.eq.s32.totalorder %s2492_s29, 1 }
  0x10   : > { %p333_p3 = scmp.eq.s32.totalorder %s1968_s30, 1  ;;  %p1969_p5 = scmp.ge.s32.totalorder %s2390_s28, 1 }
  0x11   : > { %p2501_p4 = por %p52_p1, %p51_p0  ;;  %p340_p7 = scmp.lt.s32.totalorder %s2390_s28, 3 }
  0x12   : > { %p2506_p6 = por %p333_p3, %p51_p0  ;;  %s3337_s1 = sld [smem:[#allocation19_spill]] }
  0x13   : > { %p2514_p8 = pnand %p1969_p5, %p340_p7  ;;  %s2392_s20 = smov [#allocation6]  }
  0x14   : > { %s3335_s15 = scalar_select %p2506_p6, 1, 0 }
  0x15   : > { %p2086_p9 = pneg %p2514_p8  ;;  %s353_s21 = sshll.u32 %s2392_s20, 4  ;;  %s354_s21 = int_to_ptr.vmem [resolvable:$true] %s353_s21 }
  0x16   : > { %3336 = sst [smem:[#allocation18_spill]] %s3335_s15  ;;  %s3321_s16 = smov 128  }
  0x17   : > { %p2522_p10 = pnand %p2086_p9, %p52_p1  ;;  %s3340_s7 = sld [smem:[#allocation21_spill]] }
  0x18   : > { %s351_s18 = sshll.u32 %s3337_s1, 4  ;;  %s3322_s17 = smov 8   ;;  %s352_s18 = int_to_ptr.hbm [resolvable:$true] %s351_s18 }
  0x19   : > { %2089 = dma.hbm_to_vmem [thread:$0]  (!%p2522_p10), %s352_s18, 2048, %s354_s21, [#allocation7], %s3321_s16, %s3321_s16, %s3322_s17  }
  0x1a   : > { %s2395_s20 = smov [#allocation9]   ;;  %s3341_s4 = sld [smem:[#allocation20_spill]] }
  0x1b   : > { %s393_s1 = sshll.u32 %s2395_s20, 4  ;;  %s3342_s10 = sld [smem:[#allocation22_spill]]  ;;  %s394_s1 = int_to_ptr.vmem [resolvable:$true] %s393_s1 }
  0x1c   : > { %s2396_s24 = smov [#allocation8]   ;;  %s2397_s15 = smov [#allocation11]  }
  0x1d   : > { %s391_s30 = sshll.u32 %s3340_s7, 4  ;;  %s373_s25 = sshll.u32 %s2396_s24, 4  ;;  %s392_s30 = int_to_ptr.hbm [resolvable:$true] %s391_s30  ;;  %s374_s25 = int_to_ptr.vmem [resolvable:$true] %s373_s25 }
  0x1e   : > { %2095 = dma.hbm_to_vmem [thread:$0]  (!%p2522_p10), %s392_s30, 2048, %s394_s1, [#allocation10], %s3321_s16, %s3321_s16, %s3322_s17  }
  0x1f   : > { %s413_s1 = sshll.u32 %s2397_s15, 4  ;;  %s2557_s30 = sadd.s32 1, %s2390_s28   ;;  %s414_s1 = int_to_ptr.vmem [resolvable:$true] %s413_s1 }
  0x20   : > { %s371_s13 = sshll.u32 %s3341_s4, 4  ;;  %s38_s20 = sadd.s32 1, %s2386_s27  ;;  %s372_s13 = int_to_ptr.hbm [resolvable:$true] %s371_s13 }
  0x21   : > { %s411_s23 = sshll.u32 %s3342_s10, 4  ;;  %s35_s18 = ssub.s32 %s2390_s28, %s2557_s30  ;;  %s412_s23 = int_to_ptr.hbm [resolvable:$true] %s411_s23 }
  0x22   : > { %2092 = dma.hbm_to_vmem [thread:$0]  (!%p2522_p10), %s372_s13, 18432, %s374_s25, [#allocation7], %s3321_s16, %s3321_s16, %s3322_s17  }
  0x23   : > { %2098 = dma.hbm_to_vmem [thread:$0]  (!%p2522_p10), %s412_s23, 2048, %s414_s1, [#allocation10], %s3321_s16, %s3321_s16, %s3322_s17  }
  0x24   : > { %p45_p12 = scmp.ne.s32.totalorder %s2386_s27, %s2382_s26  ;;  %p36_p13 = scmp.eq.s32.totalorder %s35_s18, 0 }
  0x25   : > { %p46_p0 = scmp.eq.s32.totalorder %s2390_s28, 0  ;;  %p2111_p5 = scmp.lt.s32.totalorder %s2390_s28, 2 }
  0x26   : > { %p2567_p3 = por %p327_p2, %p45_p12  ;;  %s433_s22 = sand.u32 1, %s2386_s27  }
  0x27   : > { %s2573_s21 = scalar_select %p36_p13, %s2386_s27, %s38_s20  }
  0x28   : > { %p47_p7 = por %p46_p0, %p45_p12  ;;  %s1975_s24 = sshll.u32 %s433_s22, 8 }
  0x29   : > { %s2016_s23 = sshll.u32 %s2390_s28, 8  ;;  %s437_s16 = scalar_lea.vmem [#allocation3], %s1975_s24 }
  0x2a   : > { %s443_s1 = scalar_lea.hbm %s3304_s0, %s2016_s23  ;;  %s446_s17 = sshll.u32 %s437_s16, 4  ;;  %s447_s17 = int_to_ptr.vmem [resolvable:$true] %s446_s17 }
  0x2b   : > { %s444_s18 = sshll.u32 %s443_s1, 4  ;;  %p2580_p2 = pnand %p2111_p5, %p47_p7  ;;  %s445_s18 = int_to_ptr.hbm [resolvable:$true] %s444_s18 }
  0x2c   : > { %s434_s20 = scalar_lea.sflag [#allocation4], %s433_s22  ;;  %s2286_s7 = sshra.s32 %s445_s18, 4  ;;  %s2287_s7 = int_to_ptr.hbm [resolvable:$true] %s2286_s7 }
  0x2d   : > { %s2288_s10 = scalar_lea.hbm %s2287_s7, 256  ;;  %p2290_p10 = pneg %p2580_p2 }
  0x2e   : > { %p2289_p9 = scmp.ne.s32.totalorder %s2287_s7, %s2288_s10  ;;  %s2293_s16 = scalar_lea.hbm %s3304_s0, 512 }
  0x2f   : > { %p2294_p0 = scmp.lt.s32.totalorder %s2287_s7, %s3304_s0  ;;  %p2295_p5 = scmp.lt.s32.totalorder %s2293_s16, %s2288_s10 }
  0x30   : > { %p2291_p12 = pnand %p2290_p10, %p2289_p9 }
  0x31   : > { %p2296_p7 = por %p2295_p5, %p2294_p0 }
  0x32   : > { %p2292_p13 = pneg %p2291_p12 }
  0x34   : > { %p2297_p11 = pnand %p2296_p7, %p2292_p13 }
  0x36   : > { %2300 = shalt.err (!%p2297_p11)
}
  0x37   : > { %s3345_s22 = smov 8   ;;  %s3346_s1 = smov 128  }
  0x38   : > { %2102 = dma.hbm_to_vmem [thread:$0]  (!%p2580_p2), %s445_s18, 4096, %s447_s17, %s434_s20, %s3346_s1, %s3346_s1, %s3345_s22  }
  0x39   : > { %458 = sbr.rel (%p2514_p8) target bundleno = 687 (0x2af), region = 72  ;;  %s2600_s23 = sand.u32 (!%p2514_p8), 1, %s2382_s26  }
  0x3a   : > { %s1980_s7 = sshll.u32 (!%p2514_p8), %s2600_s23, 8  ;;  %s461_s10 = scalar_lea.sflag (!%p2514_p8), [#allocation4], %s2600_s23 }
  0x3b   : > { %s2604_s24 = scalar_lea.vmem (!%p2514_p8), [#allocation3], %s1980_s7 }
  0x3e   : > { %2361 = dma.done.wait (%p2501_p4), %s461_s10, 4096  }
  0x3f   : > { %2363 = vsyncadd (%p2501_p4), %s461_s10, 4294963200 }
  0x40   : > { %2365 = dma.done.wait (%p52_p1), [#allocation7], 20480  }
  0x41   : > { %2367 = vsyncadd (%p52_p1), [#allocation7], 4294946816 }
  0x42   : > { %2369 = dma.done.wait (%p52_p1), [#allocation10], 4096  }
  0x43   : > { %2371 = vsyncadd (%p52_p1), [#allocation10], 4294963200  ;;  %v2618_v0 = vld [vmem:[#allocation6 + $0x78] sm:$0xff]  ;;  %v2620_v1 = vld [vmem:[#allocation6 + $0x70] sm:$0xff]  ;;  %v2398_v12 = vmov 0.0   ;;  %s1985_s19 = sshll.u32 %s2600_s23, 6 }
  0x44   : > { %2018 = vmatpush.msra.mxu3 %v2618_v0  ;;  %724 = vmatpush.msra.mxu1 %v2618_v0  ;;  %v2625_v2 = vld [vmem:[#allocation6 + $0x68] sm:$0xff]  ;;  %v2631_v3 = vld [vmem:[#allocation6 + $0x60] sm:$0xff]  ;;  %v2637_v4 = vld [vmem:[#allocation6 + $0x58] sm:$0xff]  ;;  %551 = vst [vmem:[#allocation2 + $0xb0] sm:$0xff] %v2398_v12  ;;  %s3233_s17 = scalar_lea.vmem [#allocation12], %s1985_s19  ;;  %s2017_s18 = sshll.u32 %s2492_s29, 6 }
  0x45   : > { %807 = vmatpush.msra.mxu2 %v2618_v0  ;;  %635 = vmatpush.msra.mxu0 %v2618_v0  ;;  %v2643_v5 = vld [vmem:[#allocation6 + $0x50] sm:$0xff]  ;;  %v2649_v6 = vld [vmem:[#allocation6 + $0x48] sm:$0xff]  ;;  %v2655_v7 = vld [vmem:[#allocation6 + $0x40] sm:$0xff]  ;;  %553 = vst [vmem:[#allocation2 + $0xc0] sm:$0xff] %v2398_v12  ;;  %s3352_s25 = sld [smem:[#allocation23_spill]]  ;;  %s1854_s1 = sshll.u32 %s3233_s17, 4  ;;  %s1855_s1 = int_to_ptr.vmem [resolvable:$true] %s1854_s1 }
  0x46   : > { %2019 = vmatpush.msra.mxu3 %v2620_v1  ;;  %725 = vmatpush.msra.mxu1 %v2620_v1  ;;  %v2661_v8 = vld [vmem:[#allocation6 + $0x38] sm:$0xff]  ;;  %v2667_v9 = vld [vmem:[#allocation6 + $0x30] sm:$0xff]  ;;  %v2673_v10 = vld [vmem:[#allocation6 + $0x28] sm:$0xff]  ;;  %555 = vst [vmem:[#allocation2 + $0xd0] sm:$0xff] %v2398_v12  ;;  %s1842_s29 = scalar_lea.sflag [#allocation5], %s2600_s23 }
  0x47   : > { %808 = vmatpush.msra.mxu2 %v2620_v1  ;;  %636 = vmatpush.msra.mxu0 %v2620_v1  ;;  %v2679_v11 = vld [vmem:[#allocation6 + $0x20] sm:$0xff]  ;;  %v2686_v13 = vld [vmem:[#allocation6 + $0x18] sm:$0xff]  ;;  %v2693_v14 = vld [vmem:[#allocation6 + $0x10] sm:$0xff]  ;;  %557 = vst [vmem:[#allocation2 + $0xe0] sm:$0xff] %v2398_v12 }
  0x48   : > { %2020 = vmatpush.msra.mxu3 %v2625_v2  ;;  %726 = vmatpush.msra.mxu1 %v2625_v2  ;;  %v2700_v15 = vld [vmem:[#allocation6 + $0x8] sm:$0xff]  ;;  %v2707_v16 = vld [vmem:[#allocation6] sm:$0xff]  ;;  %559 = vst [vmem:[#allocation2 + $0xf0] sm:$0xff] %v2398_v12  ;;  %v633_v23 = vld [vmem:[%s2604_s24 + $0x30] sm:$0xff] }
  0x49   : > { %809 = vmatpush.msra.mxu2 %v2625_v2  ;;  %637 = vmatpush.msra.mxu0 %v2625_v2  ;;  %v631_v17 = vld [vmem:[%s2604_s24 + $0x20] sm:$0xff]  ;;  %561 = vst [vmem:[#allocation2 + $0x100] sm:$0xff] %v2398_v12  ;;  %v632_v20 = vld [vmem:[%s2604_s24 + $0x28] sm:$0xff]  ;;  %v1988_v24 = vld [vmem:[%s2604_s24 + $0x50] sm:$0xff] }
  0x4a   : > { %2021 = vmatpush.msra.mxu3 %v2631_v3  ;;  %727 = vmatpush.msra.mxu1 %v2631_v3  ;;  %v1986_v18 = vld [vmem:[%s2604_s24 + $0x40] sm:$0xff]  ;;  %563 = vst [vmem:[#allocation2 + $0x110] sm:$0xff] %v2398_v12  ;;  %v1987_v21 = vld [vmem:[%s2604_s24 + $0x48] sm:$0xff]  ;;  %v1996_v25 = vld [vmem:[%s2604_s24 + $0x90] sm:$0xff] }
  0x4b   : > { %810 = vmatpush.msra.mxu2 %v2631_v3  ;;  %638 = vmatpush.msra.mxu0 %v2631_v3  ;;  %v1994_v19 = vld [vmem:[%s2604_s24 + $0x80] sm:$0xff]  ;;  %565 = vst [vmem:[#allocation2 + $0x120] sm:$0xff] %v2398_v12  ;;  %v1995_v22 = vld [vmem:[%s2604_s24 + $0x88] sm:$0xff]  ;;  %v634_v26 = vld [vmem:[%s2604_s24 + $0x38] sm:$0xff]  ;;  %s3353_s15 = smov %s3352_s25  ;;  %s1853_s22 = scalar_lea.hbm %s3352_s25, %s2017_s18 }
  0x4c   : > { %2022 = vmatpush.msra.mxu3 %v2637_v4  ;;  %728 = vmatpush.msra.mxu1 %v2637_v4  ;;  %569 = vst [vmem:[#allocation2 + $0x140] sm:$0xff] %v2398_v12  ;;  %v1989_v27 = vld [vmem:[%s2604_s24 + $0x58] sm:$0xff]  ;;  %v627_v29 = vld [vmem:[%s2604_s24] sm:$0xff]  ;;  %v628_v33 = vld [vmem:[%s2604_s24 + $0x8] sm:$0xff]  ;;  %s1856_s7 = sshll.u32 %s1853_s22, 4  ;;  %s2336_s19 = scalar_lea.hbm %s3353_s15, 128  ;;  %s1857_s7 = int_to_ptr.hbm [resolvable:$true] %s1856_s7 }
  0x4d   : > { %811 = vmatpush.msra.mxu2 %v2637_v4  ;;  %639 = vmatpush.msra.mxu0 %v2637_v4  ;;  %570 = vst [vmem:[#allocation2 + $0x148] sm:$0x3] %v2398_v12  ;;  %v1997_v28 = vld [vmem:[%s2604_s24 + $0x98] sm:$0xff]  ;;  %v1990_v30 = vld [vmem:[%s2604_s24 + $0x60] sm:$0xff]  ;;  %v1991_v34 = vld [vmem:[%s2604_s24 + $0x68] sm:$0xff]  ;;  %s2330_s10 = sshra.s32 %s1857_s7, 4  ;;  %s2331_s10 = int_to_ptr.hbm [resolvable:$true] %s2330_s10 }
  0x4e   : > { %2023 = vmatpush.msra.mxu3 %v2643_v5  ;;  %729 = vmatpush.msra.mxu1 %v2643_v5  ;;  %589 = vst [vmem:[#allocation2 + $0x1e0] sm:$0xff] %v2398_v12  ;;  %v2002_v31 = vld [vmem:[%s2604_s24 + $0xc0] sm:$0xff]  ;;  %v2003_v35 = vld [vmem:[%s2604_s24 + $0xc8] sm:$0xff]  ;;  %v629_v37 = vld [vmem:[%s2604_s24 + $0x10] sm:$0xff]  ;;  %p2337_p11 = scmp.lt.s32.totalorder %s2331_s10, %s3353_s15 }
  0x4f   : > { %812 = vmatpush.msra.mxu2 %v2643_v5  ;;  %640 = vmatpush.msra.mxu0 %v2643_v5  ;;  %590 = vst [vmem:[#allocation2 + $0x1e8] sm:$0x3] %v2398_v12  ;;  %v1998_v32 = vld [vmem:[%s2604_s24 + $0xa0] sm:$0xff]  ;;  %v1999_v36 = vld [vmem:[%s2604_s24 + $0xa8] sm:$0xff]  ;;  %v1992_v38 = vld [vmem:[%s2604_s24 + $0x70] sm:$0xff] }
  0x50   : > { %2024 = vmatpush.msra.mxu3 %v2649_v6  ;;  %730 = vmatpush.msra.mxu1 %v2649_v6  ;;  %591 = vst [vmem:[#allocation2 + $0x1f0] sm:$0xff] %v2398_v12  ;;  %v2004_v39 = vld [vmem:[%s2604_s24 + $0xd0] sm:$0xff]  ;;  %v630_v41 = vld [vmem:[%s2604_s24 + $0x18] sm:$0xff]  ;;  %v1119_v48 = vld [vmem:[#allocation8 + $0x168] sm:$0xff] }
  0x51   : > { %813 = vmatpush.msra.mxu2 %v2649_v6  ;;  %641 = vmatpush.msra.mxu0 %v2649_v6  ;;  %593 = vst [vmem:[#allocation2 + $0x200] sm:$0xff] %v2398_v12  ;;  %v2000_v40 = vld [vmem:[%s2604_s24 + $0xb0] sm:$0xff]  ;;  %v1121_v42 = vld [vmem:[#allocation8 + $0x178] sm:$0xff]  ;;  %v1012_v50 = vld [vmem:[#allocation8 + $0xe8] sm:$0xff] }
  0x52   : > { %2025 = vmatpush.msra.mxu3 %v2655_v7  ;;  %731 = vmatpush.msra.mxu1 %v2655_v7  ;;  %595 = vst [vmem:[#allocation2 + $0x210] sm:$0xff] %v2398_v12  ;;  %v1120_v43 = vld [vmem:[#allocation8 + $0x170] sm:$0xff]  ;;  %v1014_v44 = vld [vmem:[#allocation8 + $0xf8] sm:$0xff]  ;;  %v986_v51 = vld [vmem:[#allocation8 + $0x68] sm:$0xff] }
  0x53   : > { %814 = vmatpush.msra.mxu2 %v2655_v7  ;;  %642 = vmatpush.msra.mxu0 %v2655_v7  ;;  %597 = vst [vmem:[#allocation2 + $0x220] sm:$0xff] %v2398_v12  ;;  %v988_v45 = vld [vmem:[#allocation8 + $0x78] sm:$0xff]  ;;  %v1013_v46 = vld [vmem:[#allocation8 + $0xf0] sm:$0xff]  ;;  %v1118_v55 = vld [vmem:[#allocation8 + $0x160] sm:$0xff] }
  0x54   : > { %2026 = vmatpush.msra.mxu3 %v2661_v8  ;;  %732 = vmatpush.msra.mxu1 %v2661_v8  ;;  %599 = vst [vmem:[#allocation2 + $0x230] sm:$0xff] %v2398_v12  ;;  %v987_v47 = vld [vmem:[#allocation8 + $0x70] sm:$0xff]  ;;  %v1195_v49 = vld [vmem:[#allocation8 + $0x1f8] sm:$0xff]  ;;  %v1011_v56 = vld [vmem:[#allocation8 + $0xe0] sm:$0xff] }
  0x55   : > { %815 = vmatpush.msra.mxu2 %v2661_v8  ;;  %643 = vmatpush.msra.mxu0 %v2661_v8  ;;  %601 = vst [vmem:[#allocation2 + $0x240] sm:$0xff] %v2398_v12  ;;  %v1194_v52 = vld [vmem:[#allocation8 + $0x1f0] sm:$0xff]  ;;  %v1993_v53 = vld [vmem:[%s2604_s24 + $0x78] sm:$0xff]  ;;  %v985_v57 = vld [vmem:[#allocation8 + $0x60] sm:$0xff] }
  0x56   : > { %2027 = vmatpush.msra.mxu3 %v2667_v9  ;;  %733 = vmatpush.msra.mxu1 %v2667_v9  ;;  %603 = vst [vmem:[#allocation2 + $0x250] sm:$0xff] %v2398_v12  ;;  %v2005_v54 = vld [vmem:[%s2604_s24 + $0xd8] sm:$0xff]  ;;  %v1193_v58 = vld [vmem:[#allocation8 + $0x1e8] sm:$0xff]  ;;  %v1192_v62 = vld [vmem:[#allocation8 + $0x1e0] sm:$0xff] }
  0x57   : > { %816 = vmatpush.msra.mxu2 %v2667_v9  ;;  %644 = vmatpush.msra.mxu0 %v2667_v9  ;;  %605 = vst [vmem:[#allocation2 + $0x260] sm:$0xff] %v2398_v12  ;;  %v1117_v59 = vld [vmem:[#allocation8 + $0x158] sm:$0xff]  ;;  %v1116_v63 = vld [vmem:[#allocation8 + $0x150] sm:$0xff] }
  0x58   : > { %2028 = vmatpush.msra.mxu3 %v2673_v10  ;;  %734 = vmatpush.msra.mxu1 %v2673_v10  ;;  %v1010_v60 = vld [vmem:[#allocation8 + $0xd8] sm:$0xff] }
  0x59   : > { %817 = vmatpush.msra.mxu2 %v2673_v10  ;;  %645 = vmatpush.msra.mxu0 %v2673_v10  ;;  %v984_v61 = vld [vmem:[#allocation8 + $0x58] sm:$0xff] }
  0x5a   : > { %2029 = vmatpush.msra.mxu3 %v2679_v11  ;;  %735 = vmatpush.msra.mxu1 %v2679_v11 }
  0x5b   : > { %818 = vmatpush.msra.mxu2 %v2679_v11  ;;  %646 = vmatpush.msra.mxu0 %v2679_v11 }
  0x5c   : > { %2030 = vmatpush.msra.mxu3 %v2686_v13  ;;  %736 = vmatpush.msra.mxu1 %v2686_v13 }
  0x5d   : > { %819 = vmatpush.msra.mxu2 %v2686_v13  ;;  %647 = vmatpush.msra.mxu0 %v2686_v13 }
  0x5e   : > { %2031 = vmatpush.msra.mxu3 %v2693_v14  ;;  %737 = vmatpush.msra.mxu1 %v2693_v14 }
  0x5f   : > { %820 = vmatpush.msra.mxu2 %v2693_v14  ;;  %648 = vmatpush.msra.mxu0 %v2693_v14 }
  0x60   : > { %2032 = vmatpush.msra.mxu3 %v2700_v15  ;;  %738 = vmatpush.msra.mxu1 %v2700_v15 }
  0x61   : > { %821 = vmatpush.msra.mxu2 %v2700_v15  ;;  %649 = vmatpush.msra.mxu0 %v2700_v15 }
  0x62   : > { %2033 = vmatpush.msra.mxu3 %v2707_v16  ;;  %739 = vmatpush.msra.mxu1 %v2707_v16 }
  0x63   : > { %822 = vmatpush.msra.mxu2 %v2707_v16  ;;  %663 = vmatmul.f32.vlgmr.msra.gmra.mxu3 %v631_v17  ;;  %v1188_v17 = vld [vmem:[#allocation8 + $0x1c0] sm:$0xff] }
  0x64   : > { %740 = vmatmul.f32.vlgmr.msra.gmra.mxu1 %v1986_v18  ;;  %823 = vmatmul.f32.vlgmr.msra.gmra.mxu2 %v1994_v19  ;;  %v1005_v18 = vld [vmem:[#allocation8 + $0xb0] sm:$0xff]  ;;  %v1111_v19 = vld [vmem:[#allocation8 + $0x128] sm:$0xff] }
  0x65   : > { %890 = vmatpush.msrb.mxu3 %v2618_v0  ;;  %650 = vmatpush.msra.mxu0 %v2707_v16  ;;  %v1009_v0 = vld [vmem:[#allocation8 + $0xd0] sm:$0xff] }
  0x66   : > { %651 = vmatmul.f32.vlgmr.msra.gmra.mxu0 %v627_v29  ;;  %1122 = vmatpush.msrb.mxu2 %v1121_v42  ;;  %v977_v29 = vld [vmem:[#allocation8 + $0x20] sm:$0xff]  ;;  %v1185_v42 = vld [vmem:[#allocation8 + $0x1a8] sm:$0xff] }
  0x67   : > { %891 = vmatpush.msrb.mxu3 %v2620_v1  ;;  %1015 = vmatpush.msrb.mxu0 %v1014_v44  ;;  %v983_v1 = vld [vmem:[#allocation8 + $0x50] sm:$0xff]  ;;  %v973_v44 = vld [vmem:[#allocation8] sm:$0xff] }
  0x68   : > { %1056 = vmatpush.msrb.mxu1 %v988_v45  ;;  %1123 = vmatpush.msrb.mxu2 %v1120_v43  ;;  %v999_v43 = vld [vmem:[#allocation8 + $0x80] sm:$0xff] }
  0x69   : > { %892 = vmatpush.msrb.mxu3 %v2625_v2  ;;  %1016 = vmatpush.msrb.mxu0 %v1013_v46  ;;  %v1191_v2 = vld [vmem:[#allocation8 + $0x1d8] sm:$0xff]  ;;  %v990_v45 = vld [vmem:[#allocation2 + $0x141] sm:$0xff] }
  0x6a   : > { %1057 = vmatpush.msrb.mxu1 %v987_v47  ;;  %1124 = vmatpush.msrb.mxu2 %v1119_v48  ;;  %v1184_v46 = vld [vmem:[#allocation8 + $0x1a0] sm:$0xff]  ;;  %v2009_v47 = vld [vmem:[%s2604_s24 + $0xf8] sm:$0xff] }
  0x6b   : > { %893 = vmatpush.msrb.mxu3 %v2631_v3  ;;  %1017 = vmatpush.msrb.mxu0 %v1012_v50  ;;  %v1115_v3 = vld [vmem:[#allocation8 + $0x148] sm:$0xff]  ;;  %v1183_v48 = vld [vmem:[#allocation8 + $0x198] sm:$0xff] }
  0x6c   : > { %666 = vmatmul.f32.gmra.mxu3 %v632_v20  ;;  %743 = vmatmul.f32.gmra.mxu1 %v1987_v21  ;;  %v2007_v20 = vld [vmem:[%s2604_s24 + $0xe8] sm:$0xff]  ;;  %v2008_v21 = vld [vmem:[%s2604_s24 + $0xf0] sm:$0xff] }
  0x6d   : > { %826 = vmatmul.f32.gmra.mxu2 %v1995_v22  ;;  %894 = vmatpush.msrb.mxu3 %v2637_v4  ;;  %v1008_v4 = vld [vmem:[#allocation8 + $0xc8] sm:$0xff]  ;;  %v979_v22 = vld [vmem:[#allocation8 + $0x30] sm:$0xff] }
  0x6e   : > { %654 = vmatmul.f32.gmra.mxu0 %v628_v33  ;;  %1058 = vmatpush.msrb.mxu1 %v986_v51  ;;  %v1107_v33 = vld [vmem:[#allocation8 + $0x108] sm:$0xff]  ;;  %v1180_v51 = vld [vmem:[#allocation8 + $0x180] sm:$0xff] }
  0x6f   : > { %895 = vmatpush.msrb.mxu3 %v2643_v5  ;;  %1125 = vmatpush.msrb.mxu2 %v1118_v55  ;;  %v2006_v5 = vld [vmem:[%s2604_s24 + $0xe0] sm:$0xff]  ;;  %v1181_v50 = vld [vmem:[#allocation8 + $0x188] sm:$0xff] }
  0x70   : > { %1018 = vmatpush.msrb.mxu0 %v1011_v56  ;;  %1059 = vmatpush.msrb.mxu1 %v985_v57  ;;  %v2786_v55 = vld [vmem:[%s3306_s2] ss:$0 sm:$0xff]  ;;  %v1265_v57 = vld [vmem:[#allocation8 + $0x258] sm:$0xff] }
  0x71   : > { %896 = vmatpush.msrb.mxu3 %v2649_v6  ;;  %1126 = vmatpush.msrb.mxu2 %v1117_v59  ;;  %v982_v6 = vld [vmem:[#allocation8 + $0x48] sm:$0xff]  ;;  %v1266_v56 = vld [vmem:[#allocation8 + $0x260] sm:$0xff] }
  0x72   : > { %1019 = vmatpush.msrb.mxu0 %v1010_v60  ;;  %1060 = vmatpush.msrb.mxu1 %v984_v61 }
  0x73   : > { %897 = vmatpush.msrb.mxu3 %v2655_v7  ;;  %1127 = vmatpush.msrb.mxu2 %v1116_v63  ;;  %v1114_v7 = vld [vmem:[#allocation8 + $0x140] sm:$0xff] }
  0x74   : > { %669 = vmatmul.f32.gmra.mxu3 %v633_v23  ;;  %746 = vmatmul.f32.gmra.mxu1 %v1988_v24  ;;  %v1110_v23 = vld [vmem:[#allocation8 + $0x120] sm:$0xff]  ;;  %v2001_v24 = vld [vmem:[%s2604_s24 + $0xb8] sm:$0xff] }
  0x75   : > { %829 = vmatmul.f32.gmra.mxu2 %v1996_v25  ;;  %898 = vmatpush.msrb.mxu3 %v2661_v8  ;;  %v1190_v8 = vld [vmem:[#allocation8 + $0x1d0] sm:$0xff]  ;;  %v1004_v25 = vld [vmem:[#allocation8 + $0xa8] sm:$0xff] }
  0x76   : > { %657 = vmatmul.f32.gmra.mxu0 %v629_v37  ;;  %1061 = vmatpush.msrb.mxu1 %v983_v1  ;;  %v1106_v37 = vld [vmem:[#allocation8 + $0x100] sm:$0xff] }
  0x77   : > { %899 = vmatpush.msrb.mxu3 %v2667_v9  ;;  %1020 = vmatpush.msrb.mxu0 %v1009_v0  ;;  %v1007_v9 = vld [vmem:[#allocation8 + $0xc0] sm:$0xff] }
  0x78   : > { %1128 = vmatpush.msrb.mxu2 %v1115_v3  ;;  %1062 = vmatpush.msrb.mxu1 %v982_v6  ;;  %v1263_v3 = vld [vmem:[#allocation8 + $0x248] sm:$0xff] }
  0x79   : > { %900 = vmatpush.msrb.mxu3 %v2673_v10  ;;  %1021 = vmatpush.msrb.mxu0 %v1008_v4  ;;  %v981_v10 = vld [vmem:[#allocation8 + $0x40] sm:$0xff] }
  0x7a   : > { %1129 = vmatpush.msrb.mxu2 %v1114_v7  ;;  %1063 = vmatpush.msrb.mxu1 %v981_v10 }
  0x7b   : > { %901 = vmatpush.msrb.mxu3 %v2679_v11  ;;  %v1113_v11 = vld [vmem:[#allocation8 + $0x138] sm:$0xff]  ;;  %1022 = vmatpush.msrb.mxu0 %v1007_v9 }
  0x7c   : > { %672 = vmatmul.f32.gmra.mxu3 %v634_v26  ;;  %749 = vmatmul.f32.gmra.mxu1 %v1989_v27  ;;  %v978_v26 = vld [vmem:[#allocation8 + $0x28] sm:$0xff]  ;;  %v1109_v27 = vld [vmem:[#allocation8 + $0x118] sm:$0xff] }
  0x7d   : > { %832 = vmatmul.f32.gmra.mxu2 %v1997_v28  ;;  %902 = vmatpush.msrb.mxu3 %v2686_v13  ;;  %v1189_v13 = vld [vmem:[#allocation8 + $0x1c8] sm:$0xff]  ;;  %v1003_v28 = vld [vmem:[#allocation8 + $0xa0] sm:$0xff] }
  0x7e   : > { %660 = vmatmul.f32.gmra.mxu0 %v630_v41  ;;  %1130 = vmatpush.msrb.mxu2 %v1113_v11  ;;  %v974_v41 = vld [vmem:[#allocation8 + $0x8] sm:$0xff] }
  0x7f   : > { %903 = vmatpush.msrb.mxu3 %v2693_v14  ;;  %v1006_v14 = vld [vmem:[#allocation8 + $0xb8] sm:$0xff] }
  0x80   : > { %1023 = vmatpush.msrb.mxu0 %v1006_v14 }
  0x81   : > { %904 = vmatpush.msrb.mxu3 %v2700_v15  ;;  %v980_v15 = vld [vmem:[#allocation8 + $0x38] sm:$0xff] }
  0x82   : > { %1064 = vmatpush.msrb.mxu1 %v980_v15  ;;  %1024 = vmatpush.msrb.mxu0 %v1005_v18  ;;  %v1261_v18 = vld [vmem:[#allocation8 + $0x238] sm:$0xff] }
  0x83   : > { %905 = vmatpush.msrb.mxu3 %v2707_v16  ;;  %v1112_v16 = vld [vmem:[#allocation8 + $0x130] sm:$0xff] }
  0x84   : > { %752 = vmatmul.f32.gmra.mxu1 %v1990_v30  ;;  %906 = vmatmul.f32.vlgmr.msrb.gmra.mxu3 %v2002_v31  ;;  %v1108_v30 = vld [vmem:[#allocation8 + $0x110] sm:$0xff]  ;;  %v1002_v31 = vld [vmem:[#allocation8 + $0x98] sm:$0xff] }
  0x85   : > { %835 = vmatmul.f32.gmra.mxu2 %v1998_v32  ;;  %1196 = vmatpush.msra.mxu3 %v1195_v49  ;;  %v976_v32 = vld [vmem:[#allocation8 + $0x18] sm:$0xff]  ;;  %v1182_v49 = vld [vmem:[#allocation8 + $0x190] sm:$0xff] }
  0x86   : > { %1131 = vmatpush.msrb.mxu2 %v1112_v16  ;;  %1065 = vmatpush.msrb.mxu1 %v979_v22 }
  0x87   : > { %1197 = vmatpush.msra.mxu3 %v1194_v52  ;;  %1025 = vmatpush.msrb.mxu0 %v1004_v25  ;;  %v1269_v52 = vld [vmem:[#allocation8 + $0x278] sm:$0xff]  ;;  %v1490_v25 = vld [vmem:[#allocation8 + $0x3f0] sm:$0xff] }
  0x88   : > { %1132 = vmatpush.msrb.mxu2 %v1111_v19  ;;  %1066 = vmatpush.msrb.mxu1 %v978_v26 }
  0x89   : > { %1198 = vmatpush.msra.mxu3 %v1193_v58  ;;  %1026 = vmatpush.msrb.mxu0 %v1003_v28 }
  0x8a   : > { %1133 = vmatpush.msrb.mxu2 %v1110_v23  ;;  %1067 = vmatpush.msrb.mxu1 %v977_v29  ;;  %v1489_v29 = vld [vmem:[#allocation8 + $0x3e8] sm:$0xff] }
  0x8b   : > { %1199 = vmatpush.msra.mxu3 %v1192_v62  ;;  %1027 = vmatpush.msrb.mxu0 %v1002_v31 }
  0x8c   : > { %755 = vmatmul.f32.gmra.mxu1 %v1991_v34  ;;  %909 = vmatmul.f32.gmra.mxu3 %v2003_v35  ;;  %v1187_v34 = vld [vmem:[#allocation8 + $0x1b8] sm:$0xff]  ;;  %v1001_v35 = vld [vmem:[#allocation8 + $0x90] sm:$0xff] }
  0x8d   : > { %838 = vmatmul.f32.gmra.mxu2 %v1999_v36  ;;  %1200 = vmatpush.msra.mxu3 %v1191_v2  ;;  %v975_v36 = vld [vmem:[#allocation8 + $0x10] sm:$0xff] }
  0x8e   : > { %1134 = vmatpush.msrb.mxu2 %v1109_v27  ;;  %1068 = vmatpush.msrb.mxu1 %v976_v32  ;;  %v1264_v2 = vld [vmem:[#allocation8 + $0x250] sm:$0xff] }
  0x8f   : > { %1201 = vmatpush.msra.mxu3 %v1190_v8  ;;  %1028 = vmatpush.msrb.mxu0 %v1001_v35 }
  0x90   : > { %1135 = vmatpush.msrb.mxu2 %v1108_v30  ;;  %1069 = vmatpush.msrb.mxu1 %v975_v36  ;;  %v1260_v36 = vld [vmem:[#allocation8 + $0x230] sm:$0xff] }
  0x91   : > { %1202 = vmatpush.msra.mxu3 %v1189_v13 }
  0x92   : > { %1136 = vmatpush.msrb.mxu2 %v1107_v33  ;;  %1070 = vmatpush.msrb.mxu1 %v974_v41  ;;  %v1488_v33 = vld [vmem:[#allocation8 + $0x3e0] sm:$0xff] }
  0x93   : > { %1203 = vmatpush.msra.mxu3 %v1188_v17  ;;  %v1262_v17 = vld [vmem:[#allocation8 + $0x240] sm:$0xff] }
  0x94   : > { %758 = vmatmul.f32.gmra.mxu1 %v1992_v38  ;;  %912 = vmatmul.f32.gmra.mxu3 %v2004_v39  ;;  %v1097_v38 = vld [vmem:[#allocation2 + $0x1e1] sm:$0xff]  ;;  %v1186_v39 = vld [vmem:[#allocation8 + $0x1b0] sm:$0xff] }
  0x95   : > { %841 = vmatmul.f32.gmra.mxu2 %v2000_v40  ;;  %1204 = vmatpush.msra.mxu3 %v1187_v34  ;;  %v1000_v40 = vld [vmem:[#allocation8 + $0x88] sm:$0xff] }
  0x96   : > { %1137 = vmatpush.msrb.mxu2 %v1106_v37  ;;  %1029 = vmatpush.msrb.mxu0 %v1000_v40  ;;  %v1259_v37 = vld [vmem:[#allocation8 + $0x228] sm:$0xff]  ;;  %v1487_v40 = vld [vmem:[#allocation8 + $0x3d8] sm:$0xff] }
  0x97   : > { %1205 = vmatpush.msra.mxu3 %v1186_v39  ;;  %1071 = vmatpush.msrb.mxu1 %v973_v44  ;;  %v1486_v44 = vld [vmem:[#allocation8 + $0x3d0] sm:$0xff] }
  0x98   : > { %1030 = vmatpush.msrb.mxu0 %v999_v43 }
  0x99   : > { %1206 = vmatpush.msra.mxu3 %v1185_v42  ;;  %1031 = vmatmul.f32.vlgmr.msrb.gmra.mxu0 %v990_v45 }
  0x9a   : > { %1270 = vmatpush.msra.mxu0 %v1269_v52 }
  0x9b   : > { %1207 = vmatpush.msra.mxu3 %v1184_v46 }
  0x9c   : > { %761 = vmatmul.f32.gmra.mxu1 %v1993_v53  ;;  %915 = vmatmul.f32.gmra.mxu3 %v2005_v54  ;;  %v1268_v53 = vld [vmem:[#allocation8 + $0x270] sm:$0xff]  ;;  %v1267_v54 = vld [vmem:[#allocation8 + $0x268] sm:$0xff] }
  0x9d   : > { %844 = vmatmul.f32.gmra.mxu2 %v2001_v24  ;;  %1208 = vmatpush.msra.mxu3 %v1183_v48  ;;  %v1258_v48 = vld [vmem:[#allocation8 + $0x220] sm:$0xff] }
  0x9e   : > { %1271 = vmatpush.msra.mxu0 %v1268_v53  ;;  %v1257_v53 = vld [vmem:[#allocation8 + $0x218] sm:$0xff] }
  0x9f   : > { %1209 = vmatpush.msra.mxu3 %v1182_v49  ;;  %v1485_v49 = vld [vmem:[#allocation8 + $0x3c8] sm:$0xff] }
  0xa0   : > { %1272 = vmatpush.msra.mxu0 %v1267_v54  ;;  %v1484_v54 = vld [vmem:[#allocation8 + $0x3c0] sm:$0xff] }
  0xa1   : > { %1210 = vmatpush.msra.mxu3 %v1181_v50 }
  0xa2   : > { %1273 = vmatpush.msra.mxu0 %v1266_v56 }
  0xa3   : > { %1211 = vmatpush.msra.mxu3 %v1180_v51 }
  0xa4   : > { %918 = vmatmul.f32.gmra.mxu3 %v2006_v5  ;;  %1072 = vmatmul.f32.vlgmr.msrb.gmra.mxu1 %v2398_v12  ;;  %v2791_v12 = vld [vmem:[%s3307_s3] ss:$0 sm:$0xff] }
  0xa5   : > { %1138 = vmatmul.f32.vlgmr.msrb.gmra.mxu2 %v1097_v38  ;;  %1274 = vmatpush.msra.mxu0 %v1265_v57 }
  0xa7   : > { %1275 = vmatpush.msra.mxu0 %v1264_v2 }
  0xa9   : > { %1276 = vmatpush.msra.mxu0 %v1263_v3 }
  0xab   : > { %1277 = vmatpush.msra.mxu0 %v1262_v17 }
  0xac   : > { %921 = vmatmul.f32.gmra.mxu3 %v2007_v20 }
  0xad   : > { %1278 = vmatpush.msra.mxu0 %v1261_v18 }
  0xaf   : > { %1279 = vmatpush.msra.mxu0 %v1260_v36 }
  0xb1   : > { %1280 = vmatpush.msra.mxu0 %v1259_v37 }
  0xb3   : > { %1281 = vmatpush.msra.mxu0 %v1258_v48 }
  0xb4   : > { %924 = vmatmul.f32.gmra.mxu3 %v2008_v21  ;;  %v1491_v21 = vld [vmem:[#allocation8 + $0x3f8] sm:$0xff] }
  0xb5   : > { %1492 = vmatpush.msrb.mxu3 %v1491_v21  ;;  %1282 = vmatpush.msra.mxu0 %v1257_v53  ;;  %v1417_v21 = vld [vmem:[#allocation8 + $0x378] sm:$0xff] }
  0xb6   : > { %1418 = vmatpush.msra.mxu2 %v1417_v21 }
  0xb7   : > { %1493 = vmatpush.msrb.mxu3 %v1490_v25 }
  0xb9   : > { %1494 = vmatpush.msrb.mxu3 %v1489_v29 }
  0xbb   : > { %1495 = vmatpush.msrb.mxu3 %v1488_v33 }
  0xbc   : > { %927 = vmatmul.f32.gmra.mxu3 %v2009_v47 }
  0xbd   : > { %1496 = vmatpush.msrb.mxu3 %v1487_v40 }
  0xbf   : > { %1497 = vmatpush.msrb.mxu3 %v1486_v44 }
  0xc1   : > { %1498 = vmatpush.msrb.mxu3 %v1485_v49  ;;  %v1415_v49 = vld [vmem:[#allocation8 + $0x368] sm:$0xff] }
  0xc3   : > { %1499 = vmatpush.msrb.mxu3 %v1484_v54 }
  0xe1   : > { %v741_v58 = vpop.f32.mrf.mxu1 }
  0xe2   : > { %v765_v59 = vmul.f32 %v2786_v55, %v741_v58 }
  0xe3   : > { %v652_v58 = vpop.f32.mrf.mxu0 }
  0xe4   : > { %v2795_v60 = vadd.f32 %v2791_v12, %v765_v59 }
  0xe6   : > { %v781_v61 = vmax.f32 %v2795_v60, 0.0  ;;  %v664_v62 = vpop.f32.mrf.mxu3 }
  0xe7   : > { %v683_v63 = vmul.f32 %v2786_v55, %v664_v62  ;;  %v824_v0 = vpop.f32.mrf.mxu2 }
  0xe8   : > { %790 = vst [vmem:[#allocation2 + $0xb1] sm:$0xff] %v781_v61  ;;  %v848_v1 = vmul.f32 %v2786_v55, %v824_v0  ;;  %v1483_v0 = vld [vmem:[#allocation8 + $0x3b8] sm:$0xff] }
  0xe9   : > { %v2803_v4 = vadd.f32 %v2791_v12, %v683_v63  ;;  %v744_v5 = vpop.f32.mrf.mxu1  ;;  %v679_v63 = vmul.f32 %v2786_v55, %v652_v58  ;;  %1500 = vmatpush.msrb.mxu3 %v1483_v0  ;;  %v1343_v58 = vld [vmem:[#allocation8 + $0x2f8] sm:$0xff] }
  0xea   : > { %v2806_v6 = vadd.f32 %v2791_v12, %v848_v1  ;;  %v766_v7 = vmul.f32 %v2786_v55, %v744_v5  ;;  %v1256_v1 = vld [vmem:[#allocation8 + $0x210] sm:$0xff]  ;;  %1344 = vmatpush.msra.mxu1 %v1343_v58 }
  0xeb   : > { %v702_v8 = vmax.f32 %v2803_v4, 0.0  ;;  %1283 = vmatpush.msra.mxu0 %v1256_v1  ;;  %v655_v33 = vpop.f32.mrf.mxu0  ;;  %v1414_v1 = vld [vmem:[#allocation8 + $0x360] sm:$0xff]  ;;  %v1564_v58 = vld [vmem:[#allocation8 + $0x470] sm:$0xff] }
  0xec   : > { %v864_v9 = vmax.f32 %v2806_v6, 0.0  ;;  %v2812_v10 = vadd.f32 %v2791_v12, %v766_v7  ;;  %v2868_v7 = vadd.f32 %v2791_v12, %v679_v63  ;;  %v680_v37 = vmul.f32 %v2786_v55, %v655_v33  ;;  %v1476_v33 = vld [vmem:[#allocation8 + $0x380] sm:$0xff] }
  0xee   : > { %v782_v11 = vmax.f32 %v2812_v10, 0.0  ;;  %1034 = vmatmul.f32.gmra.mxu0 %v864_v9  ;;  %v698_v18 = vmax.f32 %v2868_v7, 0.0  ;;  %v2890_v48 = vadd.f32 %v2791_v12, %v680_v37  ;;  %v1403_v7 = vld [vmem:[#allocation8 + $0x308] sm:$0xff] }
  0xef   : > { %v667_v13 = vpop.f32.mrf.mxu3  ;;  %v1171_v14 = vld [vmem:[#allocation2 + $0xb0] sm:$0xff] }
  0xf0   : > { %791 = vst [vmem:[#allocation2 + $0xc1] sm:$0xff] %v782_v11  ;;  %v684_v15 = vmul.f32 %v2786_v55, %v667_v13  ;;  %v827_v16 = vpop.f32.mrf.mxu2  ;;  %1212 = vmatmul.f32.vlgmr.msra.gmra.mxu3 %v1171_v14  ;;  %v1482_v13 = vld [vmem:[#allocation8 + $0x3b0] sm:$0xff]  ;;  %v1255_v14 = vld [vmem:[#allocation8 + $0x208] sm:$0xff]  ;;  %v699_v54 = vmax.f32 %v2890_v48, 0.0 }
  0xf1   : > { %v849_v19 = vmul.f32 %v2786_v55, %v827_v16  ;;  %v747_v20 = vpop.f32.mrf.mxu1  ;;  %1284 = vmatpush.msra.mxu0 %v1255_v14  ;;  %1501 = vmatpush.msrb.mxu3 %v1482_v13  ;;  %v1477_v14 = vld [vmem:[#allocation8 + $0x388] sm:$0xff] }
  0xf2   : > { %v2822_v22 = vadd.f32 %v2791_v12, %v684_v15  ;;  %v767_v23 = vmul.f32 %v2786_v55, %v747_v20  ;;  %v1555_v48 = vld [vmem:[#allocation8 + $0x428] sm:$0xff] }
  0xf3   : > { %v2826_v24 = vadd.f32 %v2791_v12, %v849_v19  ;;  %v1254_v19 = vld [vmem:[#allocation8 + $0x200] sm:$0xff] }
  0xf4   : > { %v703_v26 = vmax.f32 %v2822_v22, 0.0  ;;  %v2830_v27 = vadd.f32 %v2791_v12, %v767_v23  ;;  %v1481_v23 = vld [vmem:[#allocation8 + $0x3a8] sm:$0xff]  ;;  %1285 = vmatpush.msra.mxu0 %v1254_v19  ;;  %v658_v19 = vpop.f32.mrf.mxu0 }
  0xf5   : > { %v865_v28 = vmax.f32 %v2826_v24, 0.0  ;;  %1502 = vmatpush.msrb.mxu3 %v1481_v23  ;;  %v1552_v24 = vld [vmem:[#allocation8 + $0x410] sm:$0xff] }
  0xf6   : > { %v783_v30 = vmax.f32 %v2830_v27, 0.0 }
  0xf7   : > { %v670_v31 = vpop.f32.mrf.mxu3  ;;  %v1172_v32 = vld [vmem:[#allocation2 + $0xc0] sm:$0xff]  ;;  %1037 = vmatmul.f32.gmra.mxu0 %v865_v28 }
  0xf8   : > { %792 = vst [vmem:[#allocation2 + $0xd1] sm:$0xff] %v783_v30  ;;  %v685_v34 = vmul.f32 %v2786_v55, %v670_v31  ;;  %v830_v35 = vpop.f32.mrf.mxu2  ;;  %1215 = vmatmul.f32.gmra.mxu3 %v1172_v32 }
  0xf9   : > { %v850_v38 = vmul.f32 %v2786_v55, %v830_v35  ;;  %v750_v39 = vpop.f32.mrf.mxu1 }
  0xfa   : > { %v2841_v41 = vadd.f32 %v2791_v12, %v685_v34  ;;  %v768_v42 = vmul.f32 %v2786_v55, %v750_v39  ;;  %v1480_v34 = vld [vmem:[#allocation8 + $0x3a0] sm:$0xff] }
  0xfb   : > { %v2845_v43 = vadd.f32 %v2791_v12, %v850_v38  ;;  %v1416_v38 = vld [vmem:[#allocation8 + $0x370] sm:$0xff]  ;;  %1503 = vmatpush.msrb.mxu3 %v1480_v34 }
  0xfc   : > { %v704_v45 = vmax.f32 %v2841_v41, 0.0  ;;  %v2849_v46 = vadd.f32 %v2791_v12, %v768_v42  ;;  %1419 = vmatpush.msra.mxu2 %v1416_v38  ;;  %v1479_v42 = vld [vmem:[#allocation8 + $0x398] sm:$0xff] }
  0xfd   : > { %v866_v47 = vmax.f32 %v2845_v43, 0.0  ;;  %1504 = vmatpush.msrb.mxu3 %v1479_v42 }
  0xfe   : > { %v3327_v50 = vmax.f32 %v2849_v46, 0.0  ;;  %1420 = vmatpush.msra.mxu2 %v1415_v49  ;;  %v1340_v49 = vld [vmem:[#allocation8 + $0x2e0] sm:$0xff] }
  0xff   : > { %v673_v51 = vpop.f32.mrf.mxu3  ;;  %v1173_v52 = vld [vmem:[#allocation2 + $0xd0] sm:$0xff]  ;;  %1040 = vmatmul.f32.gmra.mxu0 %v866_v47 }
 0x100   : > { %793 = vst [vmem:[#allocation2 + $0xe1] sm:$0xff] %v3327_v50  ;;  %v686_v56 = vmul.f32 %v2786_v55, %v673_v51  ;;  %v833_v57 = vpop.f32.mrf.mxu2  ;;  %1218 = vmatmul.f32.gmra.mxu3 %v1173_v52  ;;  %1421 = vmatpush.msra.mxu2 %v1414_v1  ;;  %v1339_v1 = vld [vmem:[#allocation8 + $0x2d8] sm:$0xff] }
 0x101   : > { %v851_v59 = vmul.f32 %v2786_v55, %v833_v57  ;;  %v753_v62 = vpop.f32.mrf.mxu1 }
 0x102   : > { %v2861_v2 = vadd.f32 %v2791_v12, %v686_v56  ;;  %v769_v3 = vmul.f32 %v2786_v55, %v753_v62  ;;  %v1478_v56 = vld [vmem:[#allocation8 + $0x390] sm:$0xff]  ;;  %v1565_v62 = vld [vmem:[#allocation8 + $0x478] sm:$0xff] }
 0x103   : > { %v2865_v5 = vadd.f32 %v2791_v12, %v851_v59  ;;  %v1342_v59 = vld [vmem:[#allocation8 + $0x2f0] sm:$0xff]  ;;  %1566 = vmatpush.msrb.mxu0 %v1565_v62  ;;  %1505 = vmatpush.msrb.mxu3 %v1478_v56 }
 0x104   : > { %v705_v15 = vmax.f32 %v2861_v2, 0.0  ;;  %v2872_v16 = vadd.f32 %v2791_v12, %v769_v3  ;;  %1345 = vmatpush.msra.mxu1 %v1342_v59  ;;  %v1412_v59 = vld [vmem:[#allocation8 + $0x350] sm:$0xff] }
 0x105   : > { %v867_v17 = vmax.f32 %v2865_v5, 0.0  ;;  %1506 = vmatpush.msrb.mxu3 %v1477_v14  ;;  %1567 = vmatpush.msrb.mxu0 %v1564_v58  ;;  %v661_v14 = vpop.f32.mrf.mxu0  ;;  %v1337_v58 = vld [vmem:[#allocation8 + $0x2c8] sm:$0xff] }
 0x106   : > { %v3325_v20 = vmax.f32 %v2872_v16, 0.0 }
 0x107   : > { %v907_v25 = vpop.f32.mrf.mxu3  ;;  %v1174_v29 = vld [vmem:[#allocation2 + $0xe0] sm:$0xff]  ;;  %1043 = vmatmul.f32.gmra.mxu0 %v867_v17  ;;  %1507 = vmatpush.msrb.mxu3 %v1476_v33 }
 0x108   : > { %794 = vst [vmem:[#allocation2 + $0xf1] sm:$0xff] %v3325_v20  ;;  %v836_v31 = vpop.f32.mrf.mxu2  ;;  %v931_v32 = vmul.f32 %v2786_v55, %v907_v25  ;;  %1221 = vmatmul.f32.gmra.mxu3 %v1174_v29  ;;  %v681_v25 = vmul.f32 %v2786_v55, %v658_v19  ;;  %v1413_v29 = vld [vmem:[#allocation8 + $0x358] sm:$0xff]  ;;  %v1411_v19 = vld [vmem:[#allocation8 + $0x348] sm:$0xff]  ;;  %v1410_v33 = vld [vmem:[#allocation8 + $0x340] sm:$0xff] }
 0x109   : > { %v852_v35 = vmul.f32 %v2786_v55, %v836_v31  ;;  %v756_v36 = vpop.f32.mrf.mxu1  ;;  %1422 = vmatpush.msra.mxu2 %v1413_v29  ;;  %v1338_v29 = vld [vmem:[#allocation8 + $0x2d0] sm:$0xff]  ;;  %v1407_v20 = vld [vmem:[#allocation8 + $0x328] sm:$0xff] }
 0x10a   : > { %v939_v39 = vadd.f32 %v2791_v12, %v931_v32  ;;  %v770_v40 = vmul.f32 %v2786_v55, %v756_v36  ;;  %v1341_v36 = vld [vmem:[#allocation8 + $0x2e8] sm:$0xff] }
 0x10b   : > { %v2887_v44 = vadd.f32 %v2791_v12, %v852_v35  ;;  %v2915_v35 = vadd.f32 %v2791_v12, %v681_v25  ;;  %1346 = vmatpush.msra.mxu1 %v1341_v36  ;;  %v682_v25 = vmul.f32 %v2786_v55, %v661_v14  ;;  %1423 = vmatpush.msra.mxu2 %v1412_v59  ;;  %v1562_v14 = vld [vmem:[#allocation8 + $0x460] sm:$0xff] }
 0x10c   : > { %v2892_v51 = vmax.f32 %v939_v39, 0.0  ;;  %v2895_v52 = vadd.f32 %v2791_v12, %v770_v40 }
 0x10d   : > { %v868_v53 = vmax.f32 %v2887_v44, 0.0  ;;  %v700_v42 = vmax.f32 %v2915_v35, 0.0  ;;  %1347 = vmatpush.msra.mxu1 %v1340_v49  ;;  %v2943_v49 = vadd.f32 %v2791_v12, %v682_v25  ;;  %1424 = vmatpush.msra.mxu2 %v1411_v19  ;;  %v1335_v19 = vld [vmem:[#allocation8 + $0x2b8] sm:$0xff] }
 0x10e   : > { %956 = vst [vmem:[#allocation2 + $0x1f1] sm:$0xff] %v2892_v51  ;;  %v3324_v57 = vmax.f32 %v2895_v52, 0.0  ;;  %1141 = vmatmul.f32.gmra.mxu2 %v2892_v51  ;;  %v1553_v35 = vld [vmem:[#allocation8 + $0x418] sm:$0xff]  ;;  %v3349_v10 = vmax.f32 %v2895_v52, 0.0 }
 0x10f   : > { %v910_v63 = vpop.f32.mrf.mxu3  ;;  %v1175_v0 = vld [vmem:[#allocation2 + $0xf0] sm:$0xff]  ;;  %1046 = vmatmul.f32.gmra.mxu0 %v868_v53  ;;  %1348 = vmatpush.msra.mxu1 %v1339_v1 }
 0x110   : > { %795 = vst [vmem:[#allocation2 + $0x101] sm:$0xff] %v3324_v57  ;;  %v839_v3 = vpop.f32.mrf.mxu2  ;;  %v932_v13 = vmul.f32 %v2786_v55, %v910_v63  ;;  %1224 = vmatmul.f32.gmra.mxu3 %v1175_v0  ;;  %v1563_v0 = vld [vmem:[#allocation8 + $0x468] sm:$0xff]  ;;  %1425 = vmatpush.msra.mxu2 %v1410_v33  ;;  %v1408_v33 = vld [vmem:[#allocation8 + $0x330] sm:$0xff] }
 0x111   : > { %v853_v21 = vmul.f32 %v2786_v55, %v839_v3  ;;  %v759_v23 = vpop.f32.mrf.mxu1  ;;  %1568 = vmatpush.msrb.mxu0 %v1563_v0  ;;  %1349 = vmatpush.msra.mxu1 %v1338_v29  ;;  %v701_v0 = vmax.f32 %v2943_v49, 0.0  ;;  %v1561_v29 = vld [vmem:[#allocation8 + $0x458] sm:$0xff]  ;;  %v1333_v57 = vld [vmem:[#allocation8 + $0x2a8] sm:$0xff] }
 0x112   : > { %v940_v31 = vadd.f32 %v2791_v12, %v932_v13  ;;  %v771_v32 = vmul.f32 %v2786_v55, %v759_v23  ;;  %v1662_v49 = vld [vmem:[#allocation9 + $0x78] sm:$0xff] }
 0x113   : > { %v2912_v34 = vadd.f32 %v2791_v12, %v853_v21  ;;  %1350 = vmatpush.msra.mxu1 %v1337_v58  ;;  %1569 = vmatpush.msrb.mxu0 %v1562_v14  ;;  %v1560_v58 = vld [vmem:[#allocation8 + $0x450] sm:$0xff]  ;;  %v1406_v14 = vld [vmem:[#allocation8 + $0x320] sm:$0xff] }
 0x114   : > { %v2917_v37 = vmax.f32 %v940_v31, 0.0  ;;  %v2920_v38 = vadd.f32 %v2791_v12, %v771_v32 }
 0x115   : > { %v869_v39 = vmax.f32 %v2912_v34, 0.0  ;;  %v2923_v40 = vld [vmem:[#allocation2 + $0x1f0] sm:$0xff]  ;;  %1570 = vmatpush.msrb.mxu0 %v1561_v29 }
 0x116   : > { %957 = vst [vmem:[#allocation2 + $0x201] sm:$0xff] %v2917_v37  ;;  %v3323_v56 = vmax.f32 %v2920_v38, 0.0  ;;  %1075 = vmatmul.f32.gmra.mxu1 %v2923_v40  ;;  %1144 = vmatmul.f32.gmra.mxu2 %v2917_v37  ;;  %v1750_v34 = vld [vmem:[#allocation11 + $0x70] sm:$0xff] }
 0x117   : > { %v913_v62 = vpop.f32.mrf.mxu3  ;;  %v1176_v63 = vld [vmem:[#allocation2 + $0x100] sm:$0xff]  ;;  %1049 = vmatmul.f32.gmra.mxu0 %v869_v39 }
 0x118   : > { %796 = vst [vmem:[#allocation2 + $0x111] sm:$0xff] %v3323_v56  ;;  %v842_v3 = vpop.f32.mrf.mxu2  ;;  %v933_v13 = vmul.f32 %v2786_v55, %v913_v62  ;;  %1227 = vmatmul.f32.gmra.mxu3 %v1176_v63  ;;  %1571 = vmatpush.msrb.mxu0 %v1560_v58 }
 0x119   : > { %v854_v21 = vmul.f32 %v2786_v55, %v842_v3  ;;  %v762_v23 = vpop.f32.mrf.mxu1  ;;  %v1336_v3 = vld [vmem:[#allocation8 + $0x2c0] sm:$0xff] }
 0x11a   : > { %v941_v31 = vadd.f32 %v2791_v12, %v933_v13  ;;  %v772_v32 = vmul.f32 %v2786_v55, %v762_v23  ;;  %1351 = vmatpush.msra.mxu1 %v1336_v3 }
 0x11b   : > { %v2940_v36 = vadd.f32 %v2791_v12, %v854_v21  ;;  %v1409_v21 = vld [vmem:[#allocation8 + $0x338] sm:$0xff] }
 0x11c   : > { %v2945_v62 = vmax.f32 %v941_v31, 0.0  ;;  %v2948_v59 = vadd.f32 %v2791_v12, %v772_v32  ;;  %v1334_v32 = vld [vmem:[#allocation8 + $0x2b0] sm:$0xff]  ;;  %1352 = vmatpush.msra.mxu1 %v1335_v19  ;;  %1426 = vmatpush.msra.mxu2 %v1409_v21  ;;  %v1559_v19 = vld [vmem:[#allocation8 + $0x448] sm:$0xff]  ;;  %v1331_v21 = vld [vmem:[#allocation8 + $0x298] sm:$0xff] }
 0x11d   : > { %v870_v63 = vmax.f32 %v2940_v36, 0.0  ;;  %v2951_v1 = vld [vmem:[#allocation2 + $0x200] sm:$0xff]  ;;  %1572 = vmatpush.msrb.mxu0 %v1559_v19  ;;  %v1557_v19 = vld [vmem:[#allocation8 + $0x438] sm:$0xff] }
 0x11e   : > { %958 = vst [vmem:[#allocation2 + $0x211] sm:$0xff] %v2945_v62  ;;  %v3326_v13 = vmax.f32 %v2948_v59, 0.0  ;;  %1078 = vmatmul.f32.gmra.mxu1 %v2951_v1  ;;  %1147 = vmatmul.f32.gmra.mxu2 %v2945_v62  ;;  %v3351_v41 = vmax.f32 %v2948_v59, 0.0  ;;  %v1661_v59 = vld [vmem:[#allocation9 + $0x70] sm:$0xff] }
 0x11f   : > { %v916_v23 = vpop.f32.mrf.mxu3  ;;  %v1177_v25 = vld [vmem:[#allocation2 + $0x110] sm:$0xff]  ;;  %1052 = vmatmul.f32.gmra.mxu0 %v870_v63  ;;  %1353 = vmatpush.msra.mxu1 %v1334_v32 }
 0x120   : > { %797 = vst [vmem:[#allocation2 + $0x121] sm:$0xff] %v3326_v13  ;;  %v934_v31 = vmul.f32 %v2786_v55, %v916_v23  ;;  %1230 = vmatmul.f32.gmra.mxu3 %v1177_v25  ;;  %1427 = vmatpush.msra.mxu2 %v1408_v33  ;;  %v1332_v13 = vld [vmem:[#allocation8 + $0x2a0] sm:$0xff]  ;;  %v1329_v33 = vld [vmem:[#allocation8 + $0x288] sm:$0xff] }
 0x121   : > { %1354 = vmatpush.msra.mxu1 %v1333_v57  ;;  %v1558_v57 = vld [vmem:[#allocation8 + $0x440] sm:$0xff] }
 0x122   : > { %v942_v56 = vadd.f32 %v2791_v12, %v934_v31  ;;  %1428 = vmatpush.msra.mxu2 %v1407_v20  ;;  %v1330_v20 = vld [vmem:[#allocation8 + $0x290] sm:$0xff]  ;;  %1573 = vmatpush.msrb.mxu0 %v1558_v57 }
 0x123   : > { %1355 = vmatpush.msra.mxu1 %v1332_v13  ;;  %v1404_v31 = vld [vmem:[#allocation8 + $0x310] sm:$0xff]  ;;  %v1328_v13 = vld [vmem:[#allocation8 + $0x280] sm:$0xff] }
 0x124   : > { %v2964_v3 = vmax.f32 %v942_v56, 0.0  ;;  %v1405_v56 = vld [vmem:[#allocation8 + $0x318] sm:$0xff]  ;;  %1429 = vmatpush.msra.mxu2 %v1406_v14  ;;  %v1402_v14 = vld [vmem:[#allocation8 + $0x300] sm:$0xff]  ;;  %1574 = vmatpush.msrb.mxu0 %v1557_v19 }
 0x125   : > { %v2966_v50 = vld [vmem:[#allocation2 + $0x210] sm:$0xff]  ;;  %1356 = vmatpush.msra.mxu1 %v1331_v21  ;;  %v1550_v19 = vld [vmem:[#allocation8 + $0x400] sm:$0xff] }
 0x126   : > { %959 = vst [vmem:[#allocation2 + $0x221] sm:$0xff] %v2964_v3  ;;  %1081 = vmatmul.f32.gmra.mxu1 %v2966_v50  ;;  %1150 = vmatmul.f32.gmra.mxu2 %v2964_v3 }
 0x127   : > { %v919_v23 = vpop.f32.mrf.mxu3  ;;  %v1178_v25 = vld [vmem:[#allocation2 + $0x120] sm:$0xff]  ;;  %1286 = vmatmul.f32.vlgmr.msra.gmra.mxu0 %v698_v18  ;;  %1430 = vmatpush.msra.mxu2 %v1405_v56 }
 0x128   : > { %v935_v29 = vmul.f32 %v2786_v55, %v919_v23  ;;  %1233 = vmatmul.f32.gmra.mxu3 %v1178_v25  ;;  %1357 = vmatpush.msra.mxu1 %v1330_v20  ;;  %v1556_v25 = vld [vmem:[#allocation8 + $0x430] sm:$0xff] }
 0x129   : > { %1431 = vmatpush.msra.mxu2 %v1404_v31  ;;  %1575 = vmatpush.msrb.mxu0 %v1556_v25  ;;  %v1746_v25 = vld [vmem:[#allocation11 + $0x50] sm:$0xff] }
 0x12a   : > { %v943_v32 = vadd.f32 %v2791_v12, %v935_v29  ;;  %1358 = vmatpush.msra.mxu1 %v1329_v33 }
 0x12b   : > { %1432 = vmatpush.msra.mxu2 %v1403_v7  ;;  %1576 = vmatpush.msrb.mxu0 %v1555_v48  ;;  %v1551_v7 = vld [vmem:[#allocation8 + $0x408] sm:$0xff] }
 0x12c   : > { %v2975_v58 = vmax.f32 %v943_v32, 0.0  ;;  %1359 = vmatpush.msra.mxu1 %v1328_v13 }
 0x12d   : > { %v2977_v18 = vld [vmem:[#allocation2 + $0x220] sm:$0xff]  ;;  %1433 = vmatpush.msra.mxu2 %v1402_v14 }
 0x12e   : > { %960 = vst [vmem:[#allocation2 + $0x231] sm:$0xff] %v2975_v58  ;;  %1084 = vmatmul.f32.gmra.mxu1 %v2977_v18  ;;  %1153 = vmatmul.f32.gmra.mxu2 %v2975_v58 }
 0x12f   : > { %v922_v21 = vpop.f32.mrf.mxu3  ;;  %1289 = vmatmul.f32.gmra.mxu0 %v699_v54  ;;  %2034 = vmatpush.msrb.mxu1 %v1662_v49 }
 0x130   : > { %v936_v23 = vmul.f32 %v2786_v55, %v922_v21  ;;  %1508 = vmatmul.f32.vlgmr.msrb.gmra.mxu3 %v864_v9  ;;  %v1554_v9 = vld [vmem:[#allocation8 + $0x420] sm:$0xff]  ;;  %v1747_v21 = vld [vmem:[#allocation11 + $0x58] sm:$0xff] }
 0x131   : > { %1577 = vmatpush.msrb.mxu0 %v1554_v9  ;;  %2035 = vmatpush.msrb.mxu1 %v1661_v59 }
 0x132   : > { %v944_v56 = vadd.f32 %v2791_v12, %v936_v23  ;;  %v1659_v23 = vld [vmem:[#allocation9 + $0x60] sm:$0xff] }
 0x133   : > { %1578 = vmatpush.msrb.mxu0 %v1553_v35  ;;  %v1742_v35 = vld [vmem:[#allocation11 + $0x30] sm:$0xff] }
 0x134   : > { %v2988_v29 = vmax.f32 %v944_v56, 0.0 }
 0x135   : > { %v970_v20 = vld [vmem:[#allocation2 + $0x230] sm:$0xff]  ;;  %1579 = vmatpush.msrb.mxu0 %v1552_v24  ;;  %v1655_v24 = vld [vmem:[#allocation9 + $0x40] sm:$0xff] }
 0x136   : > { %961 = vst [vmem:[#allocation2 + $0x241] sm:$0xff] %v2988_v29  ;;  %1087 = vmatmul.f32.gmra.mxu1 %v970_v20  ;;  %1156 = vmatmul.f32.gmra.mxu2 %v2988_v29 }
 0x137   : > { %v925_v54 = vpop.f32.mrf.mxu3  ;;  %1292 = vmatmul.f32.gmra.mxu0 %v700_v42  ;;  %v845_v42 = vpop.f32.mrf.mxu2 }
 0x138   : > { %v937_v6 = vmul.f32 %v2786_v55, %v925_v54  ;;  %1511 = vmatmul.f32.gmra.mxu3 %v865_v28  ;;  %v855_v28 = vmul.f32 %v2786_v55, %v845_v42  ;;  %1580 = vmatpush.msrb.mxu0 %v1551_v7  ;;  %v1658_v54 = vld [vmem:[#allocation9 + $0x58] sm:$0xff] }
 0x13a   : > { %v945_v57 = vadd.f32 %v2791_v12, %v937_v6  ;;  %v863_v33 = vadd.f32 %v2791_v12, %v855_v28  ;;  %1581 = vmatpush.msrb.mxu0 %v1550_v19  ;;  %v1657_v6 = vld [vmem:[#allocation9 + $0x50] sm:$0xff]  ;;  %v1741_v28 = vld [vmem:[#allocation11 + $0x28] sm:$0xff] }
 0x13c   : > { %v2998_v31 = vmax.f32 %v945_v57, 0.0  ;;  %v871_v13 = vmax.f32 %v863_v33, 0.0  ;;  %1663 = vmatpush.msra.mxu0 %v1662_v49  ;;  %v1744_v57 = vld [vmem:[#allocation11 + $0x40] sm:$0xff]  ;;  %v1649_v49 = vld [vmem:[#allocation9 + $0x10] sm:$0xff] }
 0x13d   : > { %v971_v32 = vld [vmem:[#allocation2 + $0x240] sm:$0xff] }
 0x13e   : > { %962 = vst [vmem:[#allocation2 + $0x251] sm:$0xff] %v2998_v31  ;;  %1090 = vmatmul.f32.gmra.mxu1 %v971_v32  ;;  %1159 = vmatmul.f32.gmra.mxu2 %v2998_v31 }
 0x13f   : > { %1295 = vmatmul.f32.gmra.mxu0 %v701_v0  ;;  %v928_v43 = vpop.f32.mrf.mxu3 }
 0x140   : > { %1514 = vmatmul.f32.gmra.mxu3 %v866_v47  ;;  %v938_v47 = vmul.f32 %v2786_v55, %v928_v43  ;;  %v3036_v55 = vpop.f32.mrf.mxu0  ;;  %1664 = vmatpush.msra.mxu0 %v1661_v59  ;;  %v1653_v43 = vld [vmem:[#allocation9 + $0x30] sm:$0xff]  ;;  %v1648_v59 = vld [vmem:[#allocation9 + $0x8] sm:$0xff] }
 0x145   : > { %v972_v14 = vld [vmem:[#allocation2 + $0x250] sm:$0xff] }
 0x146   : > { %1093 = vmatmul.f32.gmra.mxu1 %v972_v14  ;;  %1434 = vmatmul.f32.vlgmr.msra.gmra.mxu2 %v2923_v40  ;;  %v946_v40 = vadd.f32 %v2791_v12, %v938_v47  ;;  %v3347_v12 = vmax.f32 %v2849_v46, 0.0  ;;  %v3065_v46 = vpop.f32.mrf.mxu1  ;;  %v1739_v47 = vld [vmem:[#allocation11 + $0x18] sm:$0xff] }
 0x147   : > { %1298 = vmatmul.f32.gmra.mxu0 %v702_v8 }
 0x148   : > { %1517 = vmatmul.f32.gmra.mxu3 %v867_v17  ;;  %v954_v4 = vmax.f32 %v946_v40, 0.0  ;;  %v1652_v40 = vld [vmem:[#allocation9 + $0x28] sm:$0xff] }
 0x14a   : > { %963 = vst [vmem:[#allocation2 + $0x261] sm:$0xff] %v954_v4 }
 0x14e   : > { %1360 = vmatmul.f32.vlgmr.msra.gmra.mxu1 %v781_v61  ;;  %1437 = vmatmul.f32.gmra.mxu2 %v2951_v1  ;;  %v3348_v61 = vmax.f32 %v2872_v16, 0.0 }
 0x14f   : > { %1301 = vmatmul.f32.gmra.mxu0 %v703_v26  ;;  %v3350_v26 = vmax.f32 %v2920_v38, 0.0 }
 0x150   : > { %1520 = vmatmul.f32.gmra.mxu3 %v868_v53  ;;  %v1751_v53 = vld [vmem:[#allocation11 + $0x78] sm:$0xff] }
 0x151   : > { %1752 = vmatpush.msrb.mxu2 %v1751_v53  ;;  %2050 = vmatpush.msra.mxu3 %v1751_v53 }
 0x153   : > { %1753 = vmatpush.msrb.mxu2 %v1750_v34  ;;  %2051 = vmatpush.msra.mxu3 %v1750_v34  ;;  %v1728_v34 = vld [vmem:[%s2604_s24] sm:$0xff] }
 0x156   : > { %1363 = vmatmul.f32.gmra.mxu1 %v782_v11  ;;  %1440 = vmatmul.f32.gmra.mxu2 %v2966_v50  ;;  %v1400_v11 = vld [vmem:[#allocation2 + $0x260] sm:$0xff] }
 0x157   : > { %1304 = vmatmul.f32.gmra.mxu0 %v704_v45  ;;  %v3063_v45 = vpop.f32.mrf.mxu2 }
 0x158   : > { %1523 = vmatmul.f32.gmra.mxu3 %v869_v39 }
 0x15e   : > { %1366 = vmatmul.f32.gmra.mxu1 %v783_v30  ;;  %1443 = vmatmul.f32.gmra.mxu2 %v2977_v18  ;;  %v1660_v18 = vld [vmem:[#allocation9 + $0x68] sm:$0xff] }
 0x15f   : > { %1307 = vmatmul.f32.gmra.mxu0 %v705_v15  ;;  %2036 = vmatpush.msrb.mxu1 %v1660_v18 }
 0x160   : > { %1526 = vmatmul.f32.gmra.mxu3 %v870_v63  ;;  %v1748_v63 = vld [vmem:[#allocation11 + $0x60] sm:$0xff]  ;;  %1665 = vmatpush.msra.mxu0 %v1660_v18 }
 0x161   : > { %2037 = vmatpush.msrb.mxu1 %v1659_v23  ;;  %v1647_v18 = vld [vmem:[#allocation9] sm:$0xff] }
 0x162   : > { %1666 = vmatpush.msra.mxu0 %v1659_v23  ;;  %v1729_v23 = vld [vmem:[%s2604_s24 + $0x8] sm:$0xff] }
 0x163   : > { %2038 = vmatpush.msrb.mxu1 %v1658_v54 }
 0x164   : > { %1667 = vmatpush.msra.mxu0 %v1658_v54 }
 0x165   : > { %2039 = vmatpush.msrb.mxu1 %v1657_v6 }
 0x166   : > { %1369 = vmatmul.f32.gmra.mxu1 %v3347_v12  ;;  %1446 = vmatmul.f32.gmra.mxu2 %v970_v20  ;;  %v1745_v20 = vld [vmem:[#allocation11 + $0x48] sm:$0xff] }
 0x167   : > { %1582 = vmatmul.f32.vlgmr.msrb.gmra.mxu0 %v2892_v51 }
 0x168   : > { %1529 = vmatmul.f32.gmra.mxu3 %v871_v13  ;;  %1668 = vmatpush.msra.mxu0 %v1657_v6  ;;  %v1654_v13 = vld [vmem:[#allocation9 + $0x38] sm:$0xff] }
 0x16b   : > { %v3041_v60 = vpop.f32.mrf.mxu0 }
 0x16e   : > { %1372 = vmatmul.f32.gmra.mxu1 %v3348_v61  ;;  %1449 = vmatmul.f32.gmra.mxu2 %v971_v32  ;;  %v1656_v32 = vld [vmem:[#allocation9 + $0x48] sm:$0xff]  ;;  %v1651_v61 = vld [vmem:[#allocation9 + $0x20] sm:$0xff] }
 0x16f   : > { %1585 = vmatmul.f32.gmra.mxu0 %v2917_v37  ;;  %2040 = vmatpush.msrb.mxu1 %v1656_v32 }
 0x170   : > { %1669 = vmatpush.msra.mxu0 %v1656_v32  ;;  %v1730_v32 = vld [vmem:[%s2604_s24 + $0x10] sm:$0xff] }
 0x171   : > { %2041 = vmatpush.msrb.mxu1 %v1655_v24 }
 0x172   : > { %1670 = vmatpush.msra.mxu0 %v1655_v24 }
 0x173   : > { %v3056_v27 = vpop.f32.mrf.mxu3  ;;  %2042 = vmatpush.msrb.mxu1 %v1654_v13 }
 0x174   : > { %v3046_v8 = vpop.f32.mrf.mxu0  ;;  %1671 = vmatpush.msra.mxu0 %v1654_v13 }
 0x175   : > { %2043 = vmatpush.msrb.mxu1 %v1653_v43 }
 0x176   : > { %1375 = vmatmul.f32.gmra.mxu1 %v3349_v10  ;;  %1452 = vmatmul.f32.gmra.mxu2 %v972_v14  ;;  %v1740_v14 = vld [vmem:[#allocation11 + $0x20] sm:$0xff]  ;;  %v1737_v10 = vld [vmem:[#allocation11 + $0x8] sm:$0xff] }
 0x177   : > { %1588 = vmatmul.f32.gmra.mxu0 %v2945_v62  ;;  %v1749_v62 = vld [vmem:[#allocation11 + $0x68] sm:$0xff]  ;;  %2044 = vmatpush.msrb.mxu1 %v1652_v40 }
 0x178   : > { %1754 = vmatpush.msrb.mxu2 %v1749_v62  ;;  %2052 = vmatpush.msra.mxu3 %v1749_v62 }
 0x179   : > { %1672 = vmatpush.msra.mxu0 %v1653_v43  ;;  %2045 = vmatpush.msrb.mxu1 %v1651_v61 }
 0x17a   : > { %1755 = vmatpush.msrb.mxu2 %v1748_v63  ;;  %2053 = vmatpush.msra.mxu3 %v1748_v63 }
 0x17b   : > { %v3069_v2 = vpop.f32.mrf.mxu3  ;;  %1673 = vmatpush.msra.mxu0 %v1652_v40  ;;  %v1731_v40 = vld [vmem:[%s2604_s24 + $0x18] sm:$0xff] }
 0x17c   : > { %v3051_v22 = vpop.f32.mrf.mxu0  ;;  %1756 = vmatpush.msrb.mxu2 %v1747_v21  ;;  %2054 = vmatpush.msra.mxu3 %v1747_v21 }
 0x17d   : > { %1674 = vmatpush.msra.mxu0 %v1651_v61  ;;  %v3153_v61 = vld [vmem:[%s3309_s5] ss:$0 sm:$0xff] }
 0x17e   : > { %1378 = vmatmul.f32.gmra.mxu1 %v3350_v26  ;;  %1455 = vmatmul.f32.gmra.mxu2 %v1400_v11  ;;  %v1650_v26 = vld [vmem:[#allocation9 + $0x18] sm:$0xff] }
 0x17f   : > { %1591 = vmatmul.f32.gmra.mxu0 %v2964_v3  ;;  %1757 = vmatpush.msrb.mxu2 %v1746_v25 }
 0x180   : > { %2055 = vmatpush.msra.mxu3 %v1746_v25  ;;  %1675 = vmatpush.msra.mxu0 %v1650_v26 }
 0x181   : > { %1758 = vmatpush.msrb.mxu2 %v1745_v20  ;;  %2046 = vmatpush.msrb.mxu1 %v1650_v26 }
 0x182   : > { %2056 = vmatpush.msra.mxu3 %v1745_v20  ;;  %1676 = vmatpush.msra.mxu0 %v1649_v49  ;;  %v1074_v20 = vadd.f32 %v3065_v46, %v3036_v55 }
 0x183   : > { %v3078_v17 = vpop.f32.mrf.mxu3  ;;  %1759 = vmatpush.msrb.mxu2 %v1744_v57  ;;  %2047 = vmatpush.msrb.mxu1 %v1649_v49 }
 0x184   : > { %v3058_v30 = vpop.f32.mrf.mxu0  ;;  %2057 = vmatpush.msra.mxu3 %v1744_v57  ;;  %1677 = vmatpush.msra.mxu0 %v1648_v59 }
 0x185   : > { %2048 = vmatpush.msrb.mxu1 %v1648_v59 }
 0x186   : > { %1381 = vmatmul.f32.gmra.mxu1 %v3351_v41  ;;  %v1736_v41 = vld [vmem:[#allocation11] sm:$0xff]  ;;  %1678 = vmatpush.msra.mxu0 %v1647_v18 }
 0x187   : > { %1594 = vmatmul.f32.gmra.mxu0 %v2975_v58  ;;  %2049 = vmatpush.msrb.mxu1 %v1647_v18 }
 0x18b   : > { %v3087_v37 = vpop.f32.mrf.mxu3 }
 0x18c   : > { %v3067_v50 = vpop.f32.mrf.mxu0 }
 0x18f   : > { %1597 = vmatmul.f32.gmra.mxu0 %v2988_v29 }
 0x191   : > { %v3072_v5 = vpop.f32.mrf.mxu2 }
 0x193   : > { %v3074_v15 = vpop.f32.mrf.mxu1  ;;  %v3097_v0 = vpop.f32.mrf.mxu3 }
 0x194   : > { %v3076_v16 = vpop.f32.mrf.mxu0  ;;  %v1077_v24 = vadd.f32 %v3074_v15, %v3041_v60 }
 0x197   : > { %1600 = vmatmul.f32.gmra.mxu0 %v2998_v31  ;;  %v1743_v31 = vld [vmem:[#allocation11 + $0x38] sm:$0xff] }
 0x198   : > { %1760 = vmatpush.msrb.mxu2 %v1743_v31  ;;  %2058 = vmatpush.msra.mxu3 %v1743_v31  ;;  %v1163_v31 = vadd.f32 %v3063_v45, %v1074_v20 }
 0x199   : > { %v3081_v44 = vpop.f32.mrf.mxu2 }
 0x19a   : > { %1761 = vmatpush.msrb.mxu2 %v1742_v35  ;;  %2059 = vmatpush.msra.mxu3 %v1742_v35  ;;  %v1237_v35 = vadd.f32 %v3056_v27, %v1163_v31 }
 0x19b   : > { %v3083_v51 = vpop.f32.mrf.mxu1  ;;  %v3109_v9 = vpop.f32.mrf.mxu3 }
 0x19c   : > { %v3085_v52 = vpop.f32.mrf.mxu0  ;;  %1762 = vmatpush.msrb.mxu2 %v1741_v28  ;;  %2060 = vmatpush.msra.mxu3 %v1741_v28  ;;  %v1080_v45 = vadd.f32 %v3083_v51, %v3046_v8  ;;  %v3158_v8 = vld [vmem:[%s3310_s6] ss:$0 sm:$0xff] }
 0x19e   : > { %1763 = vmatpush.msrb.mxu2 %v1740_v14  ;;  %2061 = vmatpush.msra.mxu3 %v1740_v14  ;;  %v1164_v14 = vadd.f32 %v3072_v5, %v1077_v24  ;;  %v1165_v15 = vadd.f32 %v3081_v44, %v1080_v45 }
 0x19f   : > { %1603 = vmatmul.f32.gmra.mxu0 %v954_v4  ;;  %v1738_v4 = vld [vmem:[#allocation11 + $0x10] sm:$0xff] }
 0x1a0   : > { %1764 = vmatpush.msrb.mxu2 %v1739_v47  ;;  %2062 = vmatpush.msra.mxu3 %v1739_v47  ;;  %v1238_v27 = vadd.f32 %v3069_v2, %v1164_v14  ;;  %v1732_v2 = vld [vmem:[%s2604_s24 + $0x20] sm:$0xff]  ;;  %v1239_v44 = vadd.f32 %v3078_v17, %v1165_v15 }
 0x1a1   : > { %v3089_v38 = vpop.f32.mrf.mxu2 }
 0x1a2   : > { %1765 = vmatpush.msrb.mxu2 %v1738_v4  ;;  %2063 = vmatpush.msra.mxu3 %v1738_v4 }
 0x1a3   : > { %v3091_v39 = vpop.f32.mrf.mxu1  ;;  %v3117_v19 = vpop.f32.mrf.mxu3 }
 0x1a4   : > { %v3093_v36 = vpop.f32.mrf.mxu0  ;;  %1766 = vmatpush.msrb.mxu2 %v1737_v10  ;;  %2064 = vmatpush.msra.mxu3 %v1737_v10  ;;  %v1083_v51 = vadd.f32 %v3091_v39, %v3051_v22  ;;  %v1733_v39 = vld [vmem:[%s2604_s24 + $0x28] sm:$0xff] }
 0x1a5   : > { %v1311_v28 = vadd.f32 %v3093_v36, %v1237_v35 }
 0x1a6   : > { %1767 = vmatpush.msrb.mxu2 %v1736_v41  ;;  %2065 = vmatpush.msra.mxu3 %v1736_v41 }
 0x1a7   : > { %1768 = vmatmul.f32.vlgmr.msrb.gmra.mxu2 %v1728_v34 }
 0x1a9   : > { %v3095_v1 = vpop.f32.mrf.mxu2 }
 0x1ab   : > { %v3099_v3 = vpop.f32.mrf.mxu1  ;;  %v3126_v62 = vpop.f32.mrf.mxu3 }
 0x1ac   : > { %v3101_v58 = vpop.f32.mrf.mxu0  ;;  %v1086_v31 = vadd.f32 %v3099_v3, %v3058_v30  ;;  %v1734_v3 = vld [vmem:[%s2604_s24 + $0x30] sm:$0xff] }
 0x1ad   : > { %v1312_v60 = vadd.f32 %v3101_v58, %v1238_v27  ;;  %1786 = vmatmul.f32.vlgmr.msra.gmra.mxu3 %v1734_v3 }
 0x1ae   : > { %v1167_v14 = vadd.f32 %v3095_v1, %v1086_v31 }
 0x1af   : > { %1771 = vmatmul.f32.gmra.mxu2 %v1729_v23  ;;  %v1166_v23 = vadd.f32 %v3089_v38, %v1083_v51 }
 0x1b0   : > { %v1241_v45 = vadd.f32 %v3097_v0, %v1167_v14  ;;  %v1735_v0 = vld [vmem:[%s2604_s24 + $0x38] sm:$0xff]  ;;  %s2332_s24 = scalar_lea.hbm %s2331_s10, 64 }
 0x1b1   : > { %v3103_v56 = vpop.f32.mrf.mxu2  ;;  %p2333_p1 = scmp.ne.s32.totalorder %s2331_s10, %s2332_s24  ;;  %p2338_p2 = scmp.lt.s32.totalorder %s2336_s19, %s2332_s24 }
 0x1b3   : > { %v3105_v29 = vpop.f32.mrf.mxu1  ;;  %v1509_v54 = vpop.f32.mrf.mxu3  ;;  %p2334_p4 = pnand %p2333_p1, %p2567_p3  ;;  %p2339_p9 = por %p2338_p2, %p2337_p11 }
 0x1b4   : > { %v3107_v48 = vpop.f32.mrf.mxu0 }
 0x1b5   : > { %1789 = vmatmul.f32.gmra.mxu3 %v1735_v0  ;;  %p2335_p8 = pneg %p2334_p4 }
 0x1b7   : > { %1774 = vmatmul.f32.gmra.mxu2 %v1730_v32  ;;  %v1240_v32 = vadd.f32 %v3087_v37, %v1166_v23  ;;  %v1089_v37 = vadd.f32 %v3105_v29, %v3067_v50  ;;  %p2340_p10 = pnand %p2339_p9, %p2335_p8 }
 0x1b9   : > { %v3113_v33 = vpop.f32.mrf.mxu2  ;;  %v1168_v15 = vadd.f32 %v3103_v56, %v1089_v37 }
 0x1bb   : > { %v3111_v42 = vpop.f32.mrf.mxu1  ;;  %v1512_v43 = vpop.f32.mrf.mxu3  ;;  %v1242_v51 = vadd.f32 %v3109_v9, %v1168_v15  ;;  %v3210_v15 = vld [vmem:[%s3315_s11] ss:$0 sm:$0xff] }
 0x1bc   : > { %v3115_v7 = vpop.f32.mrf.mxu0 }
 0x1bd   : > { %v1314_v38 = vadd.f32 %v3115_v7, %v1240_v32 }
 0x1bf   : > { %1777 = vmatmul.f32.gmra.mxu2 %v1731_v40 }
 0x1c1   : > { %v3123_v53 = vpop.f32.mrf.mxu2 }
 0x1c3   : > { %v3119_v12 = vpop.f32.mrf.mxu1  ;;  %v1515_v58 = vpop.f32.mrf.mxu3 }
 0x1c4   : > { %v3121_v11 = vpop.f32.mrf.mxu0  ;;  %v1095_v9 = vadd.f32 %v3119_v12, %v3085_v52 }
 0x1c5   : > { %v1315_v1 = vadd.f32 %v3121_v11, %v1241_v45 }
 0x1c7   : > { %1780 = vmatmul.f32.gmra.mxu2 %v1732_v2  ;;  %v1092_v2 = vadd.f32 %v3111_v42, %v3076_v16 }
 0x1c9   : > { %v1435_v25 = vpop.f32.mrf.mxu2 }
 0x1cb   : > { %v1361_v63 = vpop.f32.mrf.mxu1  ;;  %v1518_v24 = vpop.f32.mrf.mxu3 }
 0x1cc   : > { %v3128_v21 = vpop.f32.mrf.mxu0  ;;  %v1385_v55 = vadd.f32 %v1361_v63, %v1311_v28  ;;  %v1313_v63 = vadd.f32 %v3107_v48, %v1239_v44 }
 0x1cd   : > { %v1316_v56 = vadd.f32 %v3128_v21, %v1242_v51 }
 0x1ce   : > { %v1459_v4 = vadd.f32 %v1435_v25, %v1385_v55 }
 0x1cf   : > { %1783 = vmatmul.f32.gmra.mxu2 %v1733_v39 }
 0x1d0   : > { %v1533_v5 = vadd.f32 %v1509_v54, %v1459_v4 }
 0x1d1   : > { %v1438_v13 = vpop.f32.mrf.mxu2 }
 0x1d3   : > { %v1364_v6 = vpop.f32.mrf.mxu1 }
 0x1d4   : > { %v3133_v57 = vpop.f32.mrf.mxu0  ;;  %v1386_v36 = vadd.f32 %v1364_v6, %v1312_v60 }
 0x1d6   : > { %v1460_v34 = vadd.f32 %v1438_v13, %v1386_v36  ;;  %v1521_v36 = vpop.f32.mrf.mxu3 }
 0x1d8   : > { %v1534_v54 = vadd.f32 %v1512_v43, %v1460_v34 }
 0x1d9   : > { %v1441_v10 = vpop.f32.mrf.mxu2 }
 0x1db   : > { %v1367_v47 = vpop.f32.mrf.mxu1 }
 0x1dc   : > { %v3142_v46 = vpop.f32.mrf.mxu0  ;;  %v1387_v25 = vadd.f32 %v1367_v47, %v1313_v63 }
 0x1de   : > { %v1461_v35 = vadd.f32 %v1441_v10, %v1387_v25  ;;  %v1524_v16 = vpop.f32.mrf.mxu3 }
 0x1e0   : > { %v1535_v43 = vadd.f32 %v1515_v58, %v1461_v35 }
 0x1e1   : > { %v1444_v17 = vpop.f32.mrf.mxu2 }
 0x1e3   : > { %v1370_v59 = vpop.f32.mrf.mxu1 }
 0x1e4   : > { %v1583_v26 = vpop.f32.mrf.mxu0  ;;  %v1388_v55 = vadd.f32 %v1370_v59, %v1314_v38 }
 0x1e5   : > { %v1607_v41 = vadd.f32 %v1583_v26, %v1533_v5 }
 0x1e6   : > { %v1462_v7 = vadd.f32 %v1444_v17, %v1388_v55  ;;  %v1527_v38 = vpop.f32.mrf.mxu3 }
 0x1e7   : > { %v1619_v49 = vmul.f32 %v3153_v61, %v1607_v41 }
 0x1e8   : > { %v1536_v26 = vadd.f32 %v1518_v24, %v1462_v7 }
 0x1e9   : > { %v1631_v18 = vadd.f32 %v3158_v8, %v1619_v49  ;;  %v1447_v4 = vpop.f32.mrf.mxu2  ;;  %v1169_v49 = vadd.f32 %v3113_v33, %v1092_v2 }
 0x1eb   : > { %v1639_v20 = vmax.f32 %v1631_v18, 0.0  ;;  %v1373_v13 = vpop.f32.mrf.mxu1 }
 0x1ec   : > { %v1586_v6 = vpop.f32.mrf.mxu0  ;;  %v1389_v5 = vadd.f32 %v1373_v13, %v1315_v1 }
 0x1ed   : > { %v1608_v22 = vadd.f32 %v1586_v6, %v1534_v54  ;;  %1679 = vmatmul.f32.vlgmr.msra.gmra.mxu0 %v1639_v20  ;;  %v1243_v20 = vadd.f32 %v3117_v19, %v1169_v49 }
 0x1ee   : > { %v1463_v44 = vadd.f32 %v1447_v4, %v1389_v5  ;;  %v3215_v5 = vld [vmem:[%s3312_s8] ss:$0 sm:$0xff] }
 0x1ef   : > { %v1620_v48 = vmul.f32 %v3153_v61, %v1608_v22  ;;  %v1317_v6 = vadd.f32 %v3133_v57, %v1243_v20  ;;  %v1170_v22 = vadd.f32 %v3123_v53, %v1095_v9 }
 0x1f0   : > { %v1537_v63 = vadd.f32 %v1521_v36, %v1463_v44 }
 0x1f1   : > { %v1632_v28 = vadd.f32 %v3158_v8, %v1620_v48  ;;  %v1450_v34 = vpop.f32.mrf.mxu2  ;;  %v1244_v52 = vadd.f32 %v3126_v62, %v1170_v22  ;;  %v1530_v62 = vpop.f32.mrf.mxu3 }
 0x1f3   : > { %v1640_v47 = vmax.f32 %v1632_v28, 0.0  ;;  %v1376_v41 = vpop.f32.mrf.mxu1  ;;  %v1318_v57 = vadd.f32 %v3142_v46, %v1244_v52 }
 0x1f4   : > { %v1589_v40 = vpop.f32.mrf.mxu0  ;;  %v1390_v59 = vadd.f32 %v1376_v41, %v1316_v56 }
 0x1f5   : > { %v1609_v30 = vadd.f32 %v1589_v40, %v1535_v43  ;;  %1682 = vmatmul.f32.gmra.mxu0 %v1640_v47 }
 0x1f6   : > { %v1464_v54 = vadd.f32 %v1450_v34, %v1390_v59 }
 0x1f7   : > { %v1621_v27 = vmul.f32 %v3153_v61, %v1609_v30 }
 0x1f8   : > { %v1538_v39 = vadd.f32 %v1524_v16, %v1464_v54 }
 0x1f9   : > { %v1633_v60 = vadd.f32 %v3158_v8, %v1621_v27  ;;  %v1453_v32 = vpop.f32.mrf.mxu2 }
 0x1fb   : > { %v1641_v10 = vmax.f32 %v1633_v60, 0.0  ;;  %v1379_v42 = vpop.f32.mrf.mxu1 }
 0x1fc   : > { %v1592_v50 = vpop.f32.mrf.mxu0  ;;  %v1391_v17 = vadd.f32 %v1379_v42, %v1317_v6 }
 0x1fd   : > { %v1610_v29 = vadd.f32 %v1592_v50, %v1536_v26  ;;  %1685 = vmatmul.f32.vlgmr.msrb.gmra.mxu1 %v1641_v10 }
 0x1fe   : > { %v1465_v12 = vadd.f32 %v1453_v32, %v1391_v17 }
 0x1ff   : > { %v1622_v11 = vmul.f32 %v3153_v61, %v1610_v29 }
 0x200   : > { %v1539_v53 = vadd.f32 %v1527_v38, %v1465_v12 }
 0x201   : > { %v1634_v58 = vadd.f32 %v3158_v8, %v1622_v11  ;;  %v1456_v55 = vpop.f32.mrf.mxu2 }
 0x203   : > { %v1642_v18 = vmax.f32 %v1634_v58, 0.0  ;;  %v1382_v24 = vpop.f32.mrf.mxu1 }
 0x204   : > { %v1595_v23 = vpop.f32.mrf.mxu0  ;;  %v1392_v13 = vadd.f32 %v1382_v24, %v1318_v57 }
 0x205   : > { %v1611_v25 = vadd.f32 %v1595_v23, %v1537_v63  ;;  %1688 = vmatmul.f32.gmra.mxu1 %v1642_v18 }
 0x206   : > { %v1466_v40 = vadd.f32 %v1456_v55, %v1392_v13 }
 0x207   : > { %v1623_v21 = vmul.f32 %v3153_v61, %v1611_v25 }
 0x208   : > { %v1540_v37 = vadd.f32 %v1530_v62, %v1466_v40 }
 0x209   : > { %v1635_v33 = vadd.f32 %v3158_v8, %v1623_v21 }
 0x20b   : > { %v1643_v31 = vmax.f32 %v1635_v33, 0.0 }
 0x20c   : > { %v1598_v35 = vpop.f32.mrf.mxu0 }
 0x20d   : > { %v1612_v48 = vadd.f32 %v1598_v35, %v1538_v39  ;;  %1691 = vmatmul.f32.gmra.mxu1 %v1643_v31 }
 0x20f   : > { %v1624_v19 = vmul.f32 %v3153_v61, %v1612_v48 }
 0x211   : > { %v1636_v28 = vadd.f32 %v3158_v8, %v1624_v19 }
 0x213   : > { %v1644_v14 = vmax.f32 %v1636_v28, 0.0 }
 0x214   : > { %v1601_v43 = vpop.f32.mrf.mxu0 }
 0x215   : > { %v1613_v47 = vadd.f32 %v1601_v43, %v1539_v53  ;;  %1694 = vmatmul.f32.gmra.mxu1 %v1644_v14 }
 0x217   : > { %v1625_v30 = vmul.f32 %v3153_v61, %v1613_v47 }
 0x219   : > { %v1637_v3 = vadd.f32 %v3158_v8, %v1625_v30 }
 0x21b   : > { %v1645_v45 = vmax.f32 %v1637_v3, 0.0 }
 0x21c   : > { %v1604_v7 = vpop.f32.mrf.mxu0 }
 0x21d   : > { %v1614_v27 = vadd.f32 %v1604_v7, %v1540_v37  ;;  %1697 = vmatmul.f32.gmra.mxu1 %v1645_v45 }
 0x21f   : > { %v1626_v46 = vmul.f32 %v3153_v61, %v1614_v27  ;;  %v3221_v61 = vld [vmem:[%s3316_s12] ss:$0 sm:$0xff] }
 0x221   : > { %v1638_v4 = vadd.f32 %v3158_v8, %v1626_v46  ;;  %v3226_v8 = vld [vmem:[%s3313_s9] ss:$0 sm:$0xff] }
 0x223   : > { %v1646_v1 = vmax.f32 %v1638_v4, 0.0 }
 0x225   : > { %1700 = vmatmul.f32.gmra.mxu1 %v1646_v1 }
 0x22a   : > { %v1769_v60 = vpop.f32.mrf.mxu2 }
 0x22b   : > { %v1797_v10 = vmul.f32 %v3210_v15, %v1769_v60 }
 0x22d   : > { %v1809_v50 = vadd.f32 %v3221_v61, %v1797_v10 }
 0x230   : > { %v1787_v13 = vpop.f32.mrf.mxu3 }
 0x231   : > { %v1803_v47 = vmul.f32 %v3210_v15, %v1787_v13 }
 0x232   : > { %v1772_v36 = vpop.f32.mrf.mxu2 }
 0x233   : > { %v1798_v51 = vmul.f32 %v3210_v15, %v1772_v36  ;;  %v1815_v3 = vadd.f32 %v3221_v61, %v1803_v47 }
 0x235   : > { %v1810_v58 = vadd.f32 %v3221_v61, %v1798_v51 }
 0x238   : > { %v1790_v37 = vpop.f32.mrf.mxu3 }
 0x239   : > { %v1804_v27 = vmul.f32 %v3210_v15, %v1790_v37 }
 0x23a   : > { %v1775_v0 = vpop.f32.mrf.mxu2 }
 0x23b   : > { %v1799_v59 = vmul.f32 %v3210_v15, %v1775_v0  ;;  %v1816_v60 = vadd.f32 %v3221_v61, %v1804_v27 }
 0x23d   : > { %v1811_v16 = vadd.f32 %v3221_v61, %v1799_v59 }
 0x242   : > { %v1778_v63 = vpop.f32.mrf.mxu2 }
 0x243   : > { %v1800_v20 = vmul.f32 %v3210_v15, %v1778_v63 }
 0x245   : > { %v1812_v22 = vadd.f32 %v3221_v61, %v1800_v20 }
 0x24a   : > { %v1781_v6 = vpop.f32.mrf.mxu2 }
 0x24b   : > { %v1801_v31 = vmul.f32 %v3210_v15, %v1781_v6 }
 0x24d   : > { %v1813_v52 = vadd.f32 %v3221_v61, %v1801_v31 }
 0x252   : > { %v1784_v12 = vpop.f32.mrf.mxu2 }
 0x253   : > { %v1802_v24 = vmul.f32 %v3210_v15, %v1784_v12 }
 0x255   : > { %v1814_v14 = vadd.f32 %v3221_v61, %v1802_v24 }
 0x26a   : > { %v1680_v26 = vpop.f32.mrf.mxu0 }
 0x26b   : > { %v1708_v41 = vmul.f32 %v3215_v5, %v1680_v26 }
 0x26d   : > { %v1720_v29 = vadd.f32 %v3226_v8, %v1708_v41 }
 0x26f   : > { %v1817_v2 = vadd.f32 %v1809_v50, %v1720_v29 }
 0x271   : > { %v1825_v44 = vmax.f32 %v1817_v2, 0.0 }
 0x272   : > { %v1683_v11 = vpop.f32.mrf.mxu0 }
 0x273   : > { %1833 = vst [vmem:[%s3233_s17] sm:$0xff] %v1825_v44  ;;  %v1709_v56 = vmul.f32 %v3215_v5, %v1683_v11 }
 0x275   : > { %v1721_v34 = vadd.f32 %v3226_v8, %v1709_v56 }
 0x277   : > { %v1818_v49 = vadd.f32 %v1810_v58, %v1721_v34 }
 0x279   : > { %v1826_v18 = vmax.f32 %v1818_v49, 0.0 }
 0x27a   : > { %v1686_v23 = vpop.f32.mrf.mxu1 }
 0x27b   : > { %1834 = vst [vmem:[%s3233_s17 + $0x8] sm:$0xff] %v1826_v18  ;;  %v1710_v25 = vmul.f32 %v3215_v5, %v1686_v23 }
 0x27d   : > { %v1722_v42 = vadd.f32 %v3226_v8, %v1710_v25 }
 0x27f   : > { %v1819_v9 = vadd.f32 %v1811_v16, %v1722_v42 }
 0x281   : > { %v1827_v54 = vmax.f32 %v1819_v9, 0.0 }
 0x282   : > { %v1689_v21 = vpop.f32.mrf.mxu1 }
 0x283   : > { %1835 = vst [vmem:[%s3233_s17 + $0x10] sm:$0xff] %v1827_v54  ;;  %v1711_v33 = vmul.f32 %v3215_v5, %v1689_v21 }
 0x285   : > { %v1723_v17 = vadd.f32 %v3226_v8, %v1711_v33 }
 0x287   : > { %v1820_v39 = vadd.f32 %v1812_v22, %v1723_v17 }
 0x289   : > { %v1828_v32 = vmax.f32 %v1820_v39, 0.0 }
 0x28a   : > { %v1692_v35 = vpop.f32.mrf.mxu1 }
 0x28b   : > { %1836 = vst [vmem:[%s3233_s17 + $0x18] sm:$0xff] %v1828_v32  ;;  %v1712_v48 = vmul.f32 %v3215_v5, %v1692_v35 }
 0x28d   : > { %v1724_v19 = vadd.f32 %v3226_v8, %v1712_v48 }
 0x28f   : > { %v1821_v38 = vadd.f32 %v1813_v52, %v1724_v19 }
 0x291   : > { %v1829_v57 = vmax.f32 %v1821_v38, 0.0 }
 0x292   : > { %v1695_v28 = vpop.f32.mrf.mxu1 }
 0x293   : > { %1837 = vst [vmem:[%s3233_s17 + $0x20] sm:$0xff] %v1829_v57  ;;  %v1713_v53 = vmul.f32 %v3215_v5, %v1695_v28 }
 0x295   : > { %v1725_v55 = vadd.f32 %v3226_v8, %v1713_v53 }
 0x297   : > { %v1822_v43 = vadd.f32 %v1814_v14, %v1725_v55 }
 0x299   : > { %v1830_v40 = vmax.f32 %v1822_v43, 0.0 }
 0x29a   : > { %v1698_v30 = vpop.f32.mrf.mxu1 }
 0x29b   : > { %1838 = vst [vmem:[%s3233_s17 + $0x28] sm:$0xff] %v1830_v40  ;;  %v1714_v62 = vmul.f32 %v3215_v5, %v1698_v30 }
 0x29d   : > { %v1726_v45 = vadd.f32 %v3226_v8, %v1714_v62 }
 0x29f   : > { %v1823_v7 = vadd.f32 %v1815_v3, %v1726_v45 }
 0x2a1   : > { %v1831_v46 = vmax.f32 %v1823_v7, 0.0 }
 0x2a2   : > { %v1701_v4 = vpop.f32.mrf.mxu1 }
 0x2a3   : > { %1839 = vst [vmem:[%s3233_s17 + $0x30] sm:$0xff] %v1831_v46  ;;  %v1715_v1 = vmul.f32 %v3215_v5, %v1701_v4 }
 0x2a5   : > { %v1727_v36 = vadd.f32 %v3226_v8, %v1715_v1 }
 0x2a7   : > { %v1824_v10 = vadd.f32 %v1816_v60, %v1727_v36 }
 0x2a9   : > { %v1832_v15 = vmax.f32 %v1824_v10, 0.0 }
 0x2ab   : > { %1840 = vst [vmem:[%s3233_s17 + $0x38] sm:$0xff] %v1832_v15 }
 0x2ac   : > { %2343 = shalt.err (!%p2340_p10)
}
 0x2ad   : > { %s2399_s23 = smov 128   ;;  %s2400_s17 = smov 8  }
 0x2ae   : > { %2084 = dma.vmem_to_hbm [thread:$0]  (%p2567_p3), %s1855_s1, 1024, %s1857_s7, %s1842_s29, %s2399_s23, %s2399_s23, %s2400_s17  }
 0x2af PF: > { %s3354_s16 = sld [smem:[#allocation17_spill]]  ;;  %p3356_p12 = scmp.ge.s32.totalorder %s2390_s28, 2 }
 0x2b1   : > { %p2104_p13 = pnand %p3356_p12, %p2506_p6 }
 0x2b3   : > { %p2105_p0 = pneg %p2104_p13 }
 0x2b5   : > { %s1871_s22 = sand.u32 1, %s3354_s16  }
 0x2b6   : > { %s1872_s4 = scalar_lea.sflag [#allocation5], %s1871_s22 }
 0x2b7   : > { %2373 = dma.done.wait (%p2105_p0), %s1872_s4, 1024  }
 0x2b8   : > { %2375 = vsyncadd (%p2105_p0), %s1872_s4, 4294966272  ;;  %p28_p5 = scmp.ge.s32.totalorder %s2557_s30, 4   ;;  %s3357_s25 = smov %s2382_s26 }
 0x2b9   : > { %s3358_s26 = smov %s2386_s27  ;;  %s3359_s27 = smov %s2573_s21 }
 0x2ba   : > { %s3360_s28 = smov %s2557_s30  ;;  %30 = sbr.rel (!%p28_p5) target bundleno = 13 (0xd), region = 150 }
 0x2bf   :  { %1878 = vsyncpa [#allocation4], 1 }
 0x2c0   :  { %1880 = vsyncpa [#allocation4 + $0x1], 1 }
 0x2c1   :  { %1881 = vsyncpa [#allocation7], 1 }
 0x2c2   :  { %1882 = vsyncpa [#allocation10], 1 }
 0x2c3   :  { %1883 = vsyncpa [#allocation5], 1 }
 0x2c4   :  { %1885 = vsyncpa [#allocation5 + $0x1], 1 }

</bundles_post_ra>
